<compile_context>
chip_gen: v5e
topology: v5e:2x2
jax: 0.10.0
libtpu: 0.0.40
codegen_flags: <defaults>
</compile_context>

<pallas_src>
import functools

import jax
import jax.numpy as jnp
import numpy as np
from jax.experimental import pallas as pl
from jax.experimental.pallas import tpu as pltpu

BN_EPS = 1e-5
MAX_PERIOD = 10000.0
TWO_PI = 2.0 * float(np.pi)


def _round_up(v, m):
    return ((v + m - 1) // m) * m


def _tpu_kind():
    try:
        return jax.devices()[0].device_kind.lower()
    except Exception:  # pragma: no cover - defensive
        return ""


def _linear_policy_kernel(t_ref, x_ref, freqs_ref, w1_ref, b1_ref,
                          w2_ref, b2_ref, a_ref, o_ref,
                          *, beta_min, beta_max, beta_r, interval,
                          transcendental_dtype, matmul_dtype):
    t = t_ref[...]                                    # [1, Nblk] f32 (batch on lanes)
    x = x_ref[...]                                    # [D, Nblk] f32

    # ---- timestep_embedding: unique-half args, then [cos ; sin] ----
    args = freqs_ref[...] * t                         # [half, Nblk] f32
    if np.dtype(transcendental_dtype) != np.dtype(np.float32):
        # f32 range reduction (|args| up to ~interval rad) BEFORE the bf16 cast;
        # afterwards |args| <= pi so bf16 cos/sin stay accurate (v6e/v7x bf16 EUP).
        k = jnp.floor(args * (1.0 / TWO_PI) + 0.5)
        args = args - k * TWO_PI
        args = args.astype(transcendental_dtype)
    emb = jnp.concatenate([jnp.cos(args), jnp.sin(args)], axis=0)   # [TE, Nblk]
    emb = emb.astype(matmul_dtype)

    # ---- Linear(TE, H) + SiLU (BatchNorm folded into the next linear) ----
    h = jnp.dot(w1_ref[...], emb,
                preferred_element_type=jnp.float32) + b1_ref[...]   # [H, Nblk] f32
    h = h.astype(transcendental_dtype)
    h = h * jax.nn.sigmoid(h)                                       # SiLU
    h = h.astype(matmul_dtype)

    # ---- (BatchNorm + Linear(H, 1)) folded -> exp ----
    t_map = jnp.dot(w2_ref[...], h,
                    preferred_element_type=jnp.float32) + b2_ref[...]  # [1, Nblk]
    t_out = jnp.exp(t_map)

    # ---- compute_vp_diffusion(t) = sqrt(b_min + (b_max - b_min) * (t/T)^b_r) ----
    # TODO(synk): compute_vp_diffusion source not provided; standard VP-SDE
    # diffusion coefficient assumed (matches the pure-JAX reference below).
    if beta_r == 1.0:   # static Python branch: skip the pow -> exp/log EUP pair
        g = jnp.sqrt(beta_min + ((beta_max - beta_min) / interval) * t)
    else:
        g = jnp.sqrt(beta_min + (beta_max - beta_min) * (t / interval) ** beta_r)

    scale = g * t_out                                 # [1, Nblk]

    # ---- out = scale * (A @ x): D is tiny, keep it off the MXU (VPU FMAs). ----
    d = x.shape[0]
    for i in range(d):
        row = a_ref[i, 0] * x[0:1, :]
        for j in range(1, d):
            row = row + a_ref[i, j] * x[j:j + 1, :]
        o_ref[i:i + 1, :] = (scale * row).astype(o_ref.dtype)


def linear_policy_forward(params, x, t,
                          beta_min=0.1, beta_max=10.0, beta_r=1.0, interval=100.0,
                          block_n=None, matmul_dtype=jnp.bfloat16,
                          transcendental_dtype=None):
    """Pallas implementation of LinearPolicy.forward (net_name='Linear').

    block_n: batch tile on the lane axis (multiple of 128). Default 16384
      (8192 on v7x, which has only 64 MiB VMEM and wants >=2 grid steps for
      its two TensorCores). Large tiles amortize the ~0.35 us per-grid-step
      overhead and keep DMAs bandwidth-efficient.
    matmul_dtype: operand dtype for the two MXU dots. Keep bf16 on ALL
      generations (incl. v5e - its MXU is natively bf16; f32 operands would
      decompose into multiple MXU passes). Accumulation is always f32.
    transcendental_dtype: dtype for cos/sin/sigmoid. Auto: bf16 on v6e/v7x
      (bf16 VPU/EUP), f32 on v5e and older.
    """
    if t.ndim == 0:
        t = t[None]
    n, data_dim = x.shape
    te = int(params["time_embed_dim"])
    half = te // 2
    hidden = params["w1"].shape[0]

    dk = _tpu_kind()
    is_v7 = ("v7" in dk) or ("7x" in dk)
    has_bf16_eup = ("v6" in dk) or is_v7          # v5e/v4 lack bf16 VPU/EUP
    if transcendental_dtype is None:
        transcendental_dtype = jnp.bfloat16 if has_bf16_eup else jnp.float32
    if block_n is None:
        block_n = 8192 if is_v7 else 16384

    # ---------- host-side parameter folding (tiny glue, outside the hot loop) ----------
    a_mat = (params["U"] @ jnp.diag(params["Sigma"]) @ params["V"].T).astype(jnp.float32)

    inv = jax.lax.rsqrt(params["bn_var"].astype(jnp.float32) + BN_EPS)
    bn_scale = params["bn_gamma"] * inv                                    # [H]
    w2_row = params["w2"].reshape(-1)                                      # [H]
    w2_eff = (w2_row * bn_scale).reshape(1, hidden)                        # [1, H]
    b2_eff = jnp.sum(w2_row * (params["bn_beta"] - params["bn_mean"] * bn_scale))
    b2_eff = b2_eff.reshape(1, 1).astype(jnp.float32)                      # [1, 1]

    freqs = jnp.exp(-jnp.log(MAX_PERIOD) * jnp.arange(half, dtype=jnp.float32) / half)
    freqs_col = freqs.reshape(half, 1)                                     # [half, 1]

    w1_mm = params["w1"].astype(matmul_dtype)                              # [H, TE]
    w2_mm = w2_eff.astype(matmul_dtype)                                    # [1, H]
    b1_col = params["b1"].astype(jnp.float32).reshape(hidden, 1)           # [H, 1]

    # ---------- lane-dense (batch-on-lanes) layout; pad only to lane granularity ----------
    n_pad = _round_up(n, 128)
    blk_n = _round_up(min(int(block_n), n_pad), 128)
    if is_v7 and n_pad > 128 and n_pad <= blk_n:
        # split into >=2 grid steps so both v7x TensorCores get work
        blk_n = _round_up(pl.cdiv(n_pad, 2), 128)
    grid = (pl.cdiv(n_pad, blk_n),)   # last block may be partial; OOB lanes dropped

    # NOTE: these pad/transpose passes (and the final .T) are separate host-side
    # XLA copy kernels; callers that can produce/consume the [D, N] layout
    # directly (or fuse this into a larger jit) should drop them.
    t_row = jnp.pad(t.astype(jnp.float32).reshape(1, n),
                    ((0, 0), (0, n_pad - n)), constant_values=1.0)         # [1, Np]
    x_t = jnp.pad(x.astype(jnp.float32).T, ((0, 0), (0, n_pad - n)))       # [D, Np]

    # VMEM budget: ~1.0-1.5 KiB per lane of live temporaries ([half,blk] f32 args,
    # [TE,blk] bf16 emb, [H,blk] f32 h, ...) plus double-buffered I/O (~40 B/lane).
    vmem_cap = (48 << 20) if is_v7 else (96 << 20)
    vmem_limit = int(min(vmem_cap, max(32 << 20, 3000 * blk_n)))

    cost = pl.CostEstimate(
        flops=2 * n_pad * hidden * (te + 1) + 10 * n_pad * (te + hidden + data_dim),
        transcendentals=n_pad * (te + hidden + 2),
        bytes_accessed=4 * n_pad * (1 + 2 * data_dim)
        + 2 * hidden * (te + 1) + 4 * (half + hidden + data_dim * data_dim + 2),
    )

    def _call(tdtype):
        kernel = functools.partial(
            _linear_policy_kernel,
            beta_min=float(beta_min), beta_max=float(beta_max),
            beta_r=float(beta_r), interval=float(interval),
            transcendental_dtype=tdtype, matmul_dtype=matmul_dtype,
        )
        return pl.pallas_call(
            kernel,
            out_shape=jax.ShapeDtypeStruct((data_dim, n_pad), jnp.float32),
            grid=grid,
            in_specs=[
                pl.BlockSpec((1, blk_n), lambda i: (0, i)),            # t        [1, Np]
                pl.BlockSpec((data_dim, blk_n), lambda i: (0, i)),     # x^T      [D, Np]
                pl.BlockSpec((half, 1), lambda i: (0, 0)),             # freqs    [half, 1]
                pl.BlockSpec((hidden, te), lambda i: (0, 0)),          # W1       [H, TE]
                pl.BlockSpec((hidden, 1), lambda i: (0, 0)),           # b1       [H, 1]
                pl.BlockSpec((1, hidden), lambda i: (0, 0)),           # W2 (BN)  [1, H]
                pl.BlockSpec((1, 1), lambda i: (0, 0)),                # b2 (BN)  [1, 1]
                pl.BlockSpec(memory_space=pltpu.MemorySpace.SMEM),     # A        [D, D]
            ],
            out_specs=pl.BlockSpec((data_dim, blk_n), lambda i: (0, i)),
            compiler_params=pltpu.CompilerParams(
                dimension_semantics=("parallel",),    # v7x: batch sharded over 2 TCs
                vmem_limit_bytes=vmem_limit),
            cost_estimate=cost,
        )(t_row, x_t, freqs_col, w1_mm, b1_col, w2_mm, b2_eff, a_mat)

    try:
        out_t = _call(transcendental_dtype)
    except Exception:
        if np.dtype(transcendental_dtype) == np.dtype(np.float32):
            raise
        # graceful fallback if bf16 transcendentals fail to lower on this chip
        out_t = _call(jnp.float32)

    return out_t[:, :n].T                                          # back to [N, D]


def make_params(key, data_dim=2, hidden_dim=64, time_embed_dim=128):
    """Deterministic synthetic parameters matching LinearPolicy.__init__ shapes.

    Note: the real module initializes Sigma=0, U=V=I and zero-initializes the
    last t_module linear (so the forward would be identically zero); random
    values are used here so the kernel is actually exercised.
    """
    ks = jax.random.split(key, 10)
    u_q, _ = jnp.linalg.qr(jax.random.normal(ks[0], (data_dim, data_dim)))
    v_q, _ = jnp.linalg.qr(jax.random.normal(ks[1], (data_dim, data_dim)))
    return {
        "data_dim": data_dim,
        "hidden_dim": hidden_dim,
        "time_embed_dim": time_embed_dim,
        "Sigma": jax.random.normal(ks[2], (data_dim,), jnp.float32),
        "U": u_q.astype(jnp.float32),
        "V": v_q.astype(jnp.float32),
        "w1": 0.05 * jax.random.normal(ks[3], (hidden_dim, time_embed_dim), jnp.float32),
        "b1": 0.05 * jax.random.normal(ks[4], (hidden_dim,), jnp.float32),
        "bn_gamma": 1.0 + 0.05 * jax.random.normal(ks[5], (hidden_dim,), jnp.float32),
        "bn_beta": 0.05 * jax.random.normal(ks[6], (hidden_dim,), jnp.float32),
        "bn_mean": 0.05 * jax.random.normal(ks[7], (hidden_dim,), jnp.float32),
        "bn_var": jax.random.uniform(ks[8], (hidden_dim,), jnp.float32, 0.5, 1.5),
        "w2": 0.05 * jax.random.normal(ks[9], (1, hidden_dim), jnp.float32),
    }


def reference_forward(params, x, t,
                      beta_min=0.1, beta_max=10.0, beta_r=1.0, interval=100.0):
    """Pure-JAX (f32) reference mirroring the PyTorch forward."""
    if t.ndim == 0:
        t = t[None]
    half = params["time_embed_dim"] // 2
    freqs = jnp.exp(-jnp.log(MAX_PERIOD) * jnp.arange(half, dtype=jnp.float32) / half)
    args = t[:, None].astype(jnp.float32) * freqs[None]
    emb = jnp.concatenate([jnp.cos(args), jnp.sin(args)], axis=-1)
    h = emb @ params["w1"].T + params["b1"]
    h = h * jax.nn.sigmoid(h)
    h = (h - params["bn_mean"]) / jnp.sqrt(params["bn_var"] + BN_EPS) \
        * params["bn_gamma"] + params["bn_beta"]
    t_out = jnp.exp(h @ params["w2"].T)[:, 0]
    a_mat = params["U"] @ jnp.diag(params["Sigma"]) @ params["V"].T
    out = jnp.einsum("bij,bj->bi", a_mat[None] * t_out[:, None, None], x)
    g = jnp.sqrt(beta_min + (beta_max - beta_min) * (t / interval) ** beta_r)
    return g[:, None] * out


if __name__ == "__main__":
    key = jax.random.PRNGKey(0)
    k_p, k_x, k_t = jax.random.split(key, 3)

    data_dim, hidden_dim, time_embed_dim = 2, 64, 128
    batch = 8

    params = make_params(k_p, data_dim, hidden_dim, time_embed_dim)
    x = jax.random.normal(k_x, (batch, data_dim), jnp.float32)
    t = jax.random.uniform(k_t, (batch,), jnp.float32, 1.0, 99.0)

    out = linear_policy_forward(params, x, t)
    out = jax.block_until_ready(out)

    ref = reference_forward(params, x, t)
    # bf16 MXU operands + (on v6e/v7x) bf16 transcendentals after f32 range
    # reduction -> compare at bf16-appropriate tolerance.  The only approximate
    # factor is the per-batch scalar t_out, so the error is purely relative.
    np.testing.assert_allclose(np.asarray(out), np.asarray(ref), rtol=3e-2, atol=1e-4)

    print("KERNEL_OK")
</pallas_src>

<mosaic_0001>
module attributes {stable_mosaic.version = 11 : i64} {
  func.func @_linear_policy_kernel(%arg0: i32, %arg1: memref<1x128xf32, #tpu.memory_space<vmem>>, %arg2: memref<2x128xf32, #tpu.memory_space<vmem>>, %arg3: memref<64x1xf32, #tpu.memory_space<vmem>>, %arg4: memref<64x128xbf16, #tpu.memory_space<vmem>>, %arg5: memref<64x1xf32, #tpu.memory_space<vmem>>, %arg6: memref<1x64xbf16, #tpu.memory_space<vmem>>, %arg7: memref<1x1xf32, #tpu.memory_space<vmem>>, %arg8: memref<2x2xf32, #tpu.memory_space<smem>>, %arg9: memref<2x128xf32, #tpu.memory_space<vmem>>) attributes {dimension_semantics = [#tpu.dimension_semantics<parallel>], iteration_bounds = array<i64: 1>, scalar_prefetch = 0 : i64, scratch_operands = 0 : i64, tpu.core_type = #tpu.core_type<tc>, window_params = [{transform_indices = @transform_0, window_bounds = array<i64: 1, 128>}, {transform_indices = @transform_1, window_bounds = array<i64: 2, 128>}, {pipeline_mode = #tpu.pipeline_mode<synchronous>, transform_indices = @transform_2, window_bounds = array<i64: 64, 1>}, {pipeline_mode = #tpu.pipeline_mode<synchronous>, transform_indices = @transform_3, window_bounds = array<i64: 64, 128>}, {pipeline_mode = #tpu.pipeline_mode<synchronous>, transform_indices = @transform_4, window_bounds = array<i64: 64, 1>}, {pipeline_mode = #tpu.pipeline_mode<synchronous>, transform_indices = @transform_5, window_bounds = array<i64: 1, 64>}, {pipeline_mode = #tpu.pipeline_mode<synchronous>, transform_indices = @transform_6, window_bounds = array<i64: 1, 1>}, {transform_indices = @transform_7, window_bounds = array<i64: 2, 2>}, {transform_indices = @transform_8, window_bounds = array<i64: 2, 128>}]} {
    %c0 = arith.constant 0 : index
    %c0_0 = arith.constant 0 : index
    %0 = vector.load %arg1[%c0, %c0_0] : memref<1x128xf32, #tpu.memory_space<vmem>>, vector<1x128xf32>
    %c0_1 = arith.constant 0 : index
    %c0_2 = arith.constant 0 : index
    %1 = vector.load %arg2[%c0_1, %c0_2] : memref<2x128xf32, #tpu.memory_space<vmem>>, vector<2x128xf32>
    %c0_3 = arith.constant 0 : index
    %c0_4 = arith.constant 0 : index
    %2 = vector.load %arg3[%c0_3, %c0_4] : memref<64x1xf32, #tpu.memory_space<vmem>>, vector<64x1xf32>
    %3 = vector.broadcast %2 : vector<64x1xf32> to vector<64x128xf32>
    %4 = vector.broadcast %0 : vector<1x128xf32> to vector<64x128xf32>
    %5 = arith.mulf %3, %4 : vector<64x128xf32>
    %6 = math.cos %5 : vector<64x128xf32>
    %7 = math.sin %5 : vector<64x128xf32>
    %8 = tpu.concatenate %6, %7 in 0 : vector<64x128xf32>, vector<64x128xf32> -> vector<128x128xf32>
    %9 = arith.truncf %8 : vector<128x128xf32> to vector<128x128xbf16>
    %c0_5 = arith.constant 0 : index
    %c0_6 = arith.constant 0 : index
    %10 = vector.load %arg4[%c0_5, %c0_6] : memref<64x128xbf16, #tpu.memory_space<vmem>>, vector<64x128xbf16>
    %cst = arith.constant dense<0.000000e+00> : vector<64x128xf32>
    %11 = tpu.matmul %10, %9, %cst {dimension_numbers = #tpu.dot_dimension_numbers<[1], [0], [0], [1], [0, 0, 1, 1], [], []>} : vector<64x128xbf16>, vector<128x128xbf16>, vector<64x128xf32> -> vector<64x128xf32>
    %c0_7 = arith.constant 0 : index
    %c0_8 = arith.constant 0 : index
    %12 = vector.load %arg5[%c0_7, %c0_8] : memref<64x1xf32, #tpu.memory_space<vmem>>, vector<64x1xf32>
    %13 = vector.broadcast %12 : vector<64x1xf32> to vector<64x128xf32>
    %14 = arith.addf %11, %13 : vector<64x128xf32>
    %15 = arith.negf %14 : vector<64x128xf32>
    %16 = math.exp %15 : vector<64x128xf32>
    %cst_9 = arith.constant 1.000000e+00 : f32
    %17 = vector.broadcast %cst_9 : f32 to vector<64x128xf32>
    %18 = arith.addf %17, %16 : vector<64x128xf32>
    %19 = arith.divf %17, %18 : vector<64x128xf32>
    %20 = arith.mulf %14, %19 : vector<64x128xf32>
    %21 = arith.truncf %20 : vector<64x128xf32> to vector<64x128xbf16>
    %c0_10 = arith.constant 0 : index
    %c0_11 = arith.constant 0 : index
    %22 = vector.load %arg6[%c0_10, %c0_11] : memref<1x64xbf16, #tpu.memory_space<vmem>>, vector<1x64xbf16>
    %cst_12 = arith.constant dense<0.000000e+00> : vector<1x128xf32>
    %23 = tpu.matmul %22, %21, %cst_12 {dimension_numbers = #tpu.dot_dimension_numbers<[1], [0], [0], [1], [0, 0, 1, 1], [], []>} : vector<1x64xbf16>, vector<64x128xbf16>, vector<1x128xf32> -> vector<1x128xf32>
    %c0_13 = arith.constant 0 : index
    %c0_14 = arith.constant 0 : index
    %24 = vector.load %arg7[%c0_13, %c0_14] : memref<1x1xf32, #tpu.memory_space<vmem>>, vector<1x1xf32>
    %25 = vector.broadcast %24 : vector<1x1xf32> to vector<1x128xf32>
    %26 = arith.addf %23, %25 : vector<1x128xf32>
    %27 = math.exp %26 : vector<1x128xf32>
    %cst_15 = arith.constant 0.0989999994 : f32
    %28 = vector.broadcast %cst_15 : f32 to vector<1x128xf32>
    %29 = arith.mulf %28, %0 : vector<1x128xf32>
    %cst_16 = arith.constant 1.000000e-01 : f32
    %30 = vector.broadcast %cst_16 : f32 to vector<1x128xf32>
    %31 = arith.addf %30, %29 : vector<1x128xf32>
    %32 = math.sqrt %31 : vector<1x128xf32>
    %33 = arith.mulf %32, %27 : vector<1x128xf32>
    %c0_17 = arith.constant 0 : index
    %c0_18 = arith.constant 0 : index
    %34 = memref.load %arg8[%c0_17, %c0_18] : memref<2x2xf32, #tpu.memory_space<smem>>
    %35 = vector.extract_strided_slice %1 {offsets = [0, 0], sizes = [1, 128], strides = [1, 1]} : vector<2x128xf32> to vector<1x128xf32>
    %36 = vector.broadcast %34 : f32 to vector<1x128xf32>
    %37 = arith.mulf %36, %35 : vector<1x128xf32>
    %c0_19 = arith.constant 0 : index
    %c1 = arith.constant 1 : index
    %38 = memref.load %arg8[%c0_19, %c1] : memref<2x2xf32, #tpu.memory_space<smem>>
    %39 = vector.extract_strided_slice %1 {offsets = [1, 0], sizes = [1, 128], strides = [1, 1]} : vector<2x128xf32> to vector<1x128xf32>
    %40 = vector.broadcast %38 : f32 to vector<1x128xf32>
    %41 = arith.mulf %40, %39 : vector<1x128xf32>
    %42 = arith.addf %37, %41 : vector<1x128xf32>
    %43 = arith.mulf %33, %42 : vector<1x128xf32>
    %c0_20 = arith.constant 0 : index
    %c0_21 = arith.constant 0 : index
    %44 = vector.load %arg9[%c0_20, %c0_21] : memref<2x128xf32, #tpu.memory_space<vmem>>, vector<1x128xf32>
    tpu.vector_store %arg9[%c0_20, %c0_21], %43 {strides = array<i32>} : memref<2x128xf32, #tpu.memory_space<vmem>>, vector<1x128xf32>,
    %c1_22 = arith.constant 1 : index
    %c0_23 = arith.constant 0 : index
    %45 = memref.load %arg8[%c1_22, %c0_23] : memref<2x2xf32, #tpu.memory_space<smem>>
    %46 = vector.extract_strided_slice %1 {offsets = [0, 0], sizes = [1, 128], strides = [1, 1]} : vector<2x128xf32> to vector<1x128xf32>
    %47 = vector.broadcast %45 : f32 to vector<1x128xf32>
    %48 = arith.mulf %47, %46 : vector<1x128xf32>
    %c1_24 = arith.constant 1 : index
    %c1_25 = arith.constant 1 : index
    %49 = memref.load %arg8[%c1_24, %c1_25] : memref<2x2xf32, #tpu.memory_space<smem>>
    %50 = vector.extract_strided_slice %1 {offsets = [1, 0], sizes = [1, 128], strides = [1, 1]} : vector<2x128xf32> to vector<1x128xf32>
    %51 = vector.broadcast %49 : f32 to vector<1x128xf32>
    %52 = arith.mulf %51, %50 : vector<1x128xf32>
    %53 = arith.addf %48, %52 : vector<1x128xf32>
    %54 = arith.mulf %33, %53 : vector<1x128xf32>
    %c1_26 = arith.constant 1 : index
    %c0_27 = arith.constant 0 : index
    %55 = vector.load %arg9[%c1_26, %c0_27] : memref<2x128xf32, #tpu.memory_space<vmem>>, vector<1x128xf32>
    tpu.vector_store %arg9[%c1_26, %c0_27], %54 {strides = array<i32>} : memref<2x128xf32, #tpu.memory_space<vmem>>, vector<1x128xf32>,
    return
  }
  func.func @transform_0(%arg0: i32) -> (i32, i32) {
    %c0_i32 = arith.constant 0 : i32
    %c0_i32_0 = arith.constant 0 : i32
    return %c0_i32, %arg0 : i32, i32
  }
  func.func @transform_1(%arg0: i32) -> (i32, i32) {
    %c0_i32 = arith.constant 0 : i32
    %c0_i32_0 = arith.constant 0 : i32
    return %c0_i32, %arg0 : i32, i32
  }
  func.func @transform_2(%arg0: i32) -> (i32, i32) {
    %c0_i32 = arith.constant 0 : i32
    %c0_i32_0 = arith.constant 0 : i32
    %c0_i32_1 = arith.constant 0 : i32
    return %c0_i32, %c0_i32_0 : i32, i32
  }
  func.func @transform_3(%arg0: i32) -> (i32, i32) {
    %c0_i32 = arith.constant 0 : i32
    %c0_i32_0 = arith.constant 0 : i32
    %c0_i32_1 = arith.constant 0 : i32
    return %c0_i32, %c0_i32_0 : i32, i32
  }
  func.func @transform_4(%arg0: i32) -> (i32, i32) {
    %c0_i32 = arith.constant 0 : i32
    %c0_i32_0 = arith.constant 0 : i32
    %c0_i32_1 = arith.constant 0 : i32
    return %c0_i32, %c0_i32_0 : i32, i32
  }
  func.func @transform_5(%arg0: i32) -> (i32, i32) {
    %c0_i32 = arith.constant 0 : i32
    %c0_i32_0 = arith.constant 0 : i32
    %c0_i32_1 = arith.constant 0 : i32
    return %c0_i32, %c0_i32_0 : i32, i32
  }
  func.func @transform_6(%arg0: i32) -> (i32, i32) {
    %c0_i32 = arith.constant 0 : i32
    %c0_i32_0 = arith.constant 0 : i32
    %c0_i32_1 = arith.constant 0 : i32
    return %c0_i32, %c0_i32_0 : i32, i32
  }
  func.func @transform_7(%arg0: i32) -> (i32, i32) {
    %c0_i32 = arith.constant 0 : i32
    %c0_i32_0 = arith.constant 0 : i32
    %c0_i32_1 = arith.constant 0 : i32
    return %c0_i32, %c0_i32_0 : i32, i32
  }
  func.func @transform_8(%arg0: i32) -> (i32, i32) {
    %c0_i32 = arith.constant 0 : i32
    %c0_i32_0 = arith.constant 0 : i32
    return %c0_i32, %arg0 : i32, i32
  }
}

</mosaic_0001>

<bundles_post_ra>
// kernel: tpu_custom_call.1
= control target key start
LH: loop header
LB: loop body
LE: loop exit
PB: predicated region body
PF: predicated region fallthrough
CT: control target
= control target key end

     0   :  { %s4501_s0 = inlined_call_operand.vmem [shape: f32[1,128], index: 0, kind: input, shape index: {}]   ;;  %s4502_s1 = inlined_call_operand.vmem [shape: f32[2,128], index: 1, kind: input, shape index: {}]   ;;  %s4503_s2 = inlined_call_operand.vmem [shape: f32[64,1], index: 2, kind: input, shape index: {}]   ;;  %s4504_s3 = inlined_call_operand.vmem [shape: bf16[64,128], index: 3, kind: input, shape index: {}]   ;;  %s4505_s4 = inlined_call_operand.vmem [shape: f32[64,1], index: 4, kind: input, shape index: {}]   ;;  %s4506_s5 = inlined_call_operand.vmem [shape: bf16[1,64], index: 5, kind: input, shape index: {}]   ;;  %s4507_s6 = inlined_call_operand.<no memory space> [shape: f32[1,1], index: 6, kind: input, shape index: {}]   ;;  %s4508_s7 = inlined_call_operand.vmem [shape: f32[2,2], index: 7, kind: input, shape index: {}]   ;;  %s4509_s8 = inlined_call_operand.hbm [shape: f32[2,128], index: 8, kind: output, shape index: {}]  }
   0x1   :  { %v13_v0 = vstv %s4507_s6 }
   0x2   :  { %14 = vst [vmem:[#allocation2] sm:$0x1] %v13_v0 }
   0x3   :  { %15 = vsyncpa [#allocation5], 0 }
   0x4   :  { %16 = vsyncpa [#allocation4], 0  ;;  %s36_s9 = sshll.u32 %s4508_s7, 4  ;;  %s3129_s10 = smov [#allocation3]   ;;  %s37_s9 = int_to_ptr.vmem [resolvable:$true] %s36_s9 }
   0x5   :  { %39 = dma.vmem_to_smem %s37_s9, 32, %s3129_s10, [#allocation5]  }
   0x6   :  { %3125 = dma.done.wait [#allocation5], 32  }
   0x7   :  { %3126 = vsyncadd [#allocation5], 4294967264 }
   0x8   :  { %44 = sfence }
   0x9   :  { %v54_v1 = vld [vmem:[%s4503_s2 + $0x30] sm:$0xff]  ;;  %v52_v2 = vld [vmem:[%s4503_s2 + $0x20] sm:$0xff]  ;;  %v4524_v4 = vmov 0   ;;  %v53_v5 = vld [vmem:[%s4503_s2 + $0x28] sm:$0xff]  ;;  %v4522_v39 = vmov 683565275  }
   0xa   :  { %v50_v3 = vld [vmem:[%s4503_s2 + $0x10] sm:$0xff]  ;;  %3050 = vset.pattern.permute.xlu2 %v4524_v4  ;;  %3049 = vset.pattern.permute.xlu1 %v4524_v4  ;;  %v55_v6 = vld [vmem:[%s4503_s2 + $0x38] sm:$0xff]  ;;  %v49_v8 = vld [vmem:[%s4503_s2 + $0x8] sm:$0xff]  ;;  %v4520_v41 = vmov 2475754826   ;;  %s3016_s30 = sld [smem:[#allocation3 + $0x1]] }
   0xb   :  { %3048 = vset.pattern.permute.xlu0 %v4524_v4  ;;  %78 = vperm.xlu1 %3049, %v52_v2   ;;  %v51_v7 = vld [vmem:[%s4503_s2 + $0x18] sm:$0xff]  ;;  %v2601_v9 = vld [vmem:[%s4505_s4 + $0x30] sm:$0xff]  ;;  %v48_v10 = vld [vmem:[%s4503_s2] sm:$0xff]  ;;  %v4518_v43 = vmov 2131351028   ;;  %s3018_s9 = sld [smem:[#allocation3 + $0x81]] }
   0xc   :  { %88 = vperm.xlu0 %3048, %v54_v1   ;;  %68 = vperm.xlu2 %3050, %v50_v3   ;;  %v2599_v11 = vld [vmem:[%s4505_s4 + $0x20] sm:$0xff]  ;;  %v2600_v12 = vld [vmem:[%s4505_s4 + $0x28] sm:$0xff]  ;;  %v2602_v13 = vld [vmem:[%s4505_s4 + $0x38] sm:$0xff]  ;;  %v4516_v45 = vmov 2102212464   ;;  %s2902_s10 = sld [smem:[#allocation3]] }
   0xd   :  { %v2598_v14 = vld [vmem:[%s4505_s4 + $0x18] sm:$0xff]  ;;  %v2595_v15 = vld [vmem:[%s4505_s4] sm:$0xff]  ;;  %v2597_v16 = vld [vmem:[%s4505_s4 + $0x10] sm:$0xff]  ;;  %v4513_v47 = vmov 920167782   ;;  %s3017_s11 = sld [smem:[#allocation3 + $0x80]] }
   0xe   :  { %v2861_v17 = vld [vmem:[#allocation2] sm:$0x1]  ;;  %v2596_v18 = vld [vmem:[%s4505_s4 + $0x8] sm:$0xff]  ;;  %v4511_v55 = vmov 1326507024   ;;  %s2933_s14 = sshll.u32 %s4509_s8, 4  ;;  %s2934_s14 = int_to_ptr.hbm [resolvable:$true] %s2933_s14 }
   0xf   :  { %v3243_v19 = vld [vmem:[%s4501_s0] ss:$0 sm:$0xff] }
  0x13   :  { %83 = vperm.xlu1 %3049, %v53_v5  }
  0x14   :  { %93 = vperm.xlu0 %3048, %v55_v6   ;;  %73 = vperm.xlu2 %3050, %v51_v7  }
  0x1b   :  { %63 = vperm.xlu1 %3049, %v49_v8  }
  0x1c   :  { %2635 = vperm.xlu2 %3050, %v2601_v9   ;;  %58 = vperm.xlu0 %3048, %v48_v10  }
  0x23   :  { %2625 = vperm.xlu1 %3049, %v2599_v11  }
  0x24   :  { %2630 = vperm.xlu2 %3050, %v2600_v12   ;;  %2640 = vperm.xlu0 %3048, %v2602_v13  }
  0x2b   :  { %2620 = vperm.xlu1 %3049, %v2598_v14  }
  0x2c   :  { %2605 = vperm.xlu2 %3050, %v2595_v15   ;;  %2615 = vperm.xlu0 %3048, %v2597_v16  }
  0x33   :  { %2864 = vperm.xlu1 %3049, %v2861_v17  }
  0x34   :  { %2610 = vperm.xlu0 %3048, %v2596_v18  }
  0x66   :  { %v69_v20 = vpop.permute.xlu2 %68 }
  0x67   :  { %v3246_v21 = vmul.f32 %v3243_v19, %v69_v20 }
  0x69   :  { %v415_v22 = vand.u32 2147483647, %v3246_v21  ;;  %v418_v23 = vand.u32 2139095040, %v3246_v21 }
  0x6b   :  { %v419_v24 = vshrl.u32 %v418_v23, 23  ;;  %v422_v25 = vand.u32 8388607, %v415_v22 }
  0x6d   :  { %v2949_v26 = vadd.s32 4294967169, %v419_v24  ;;  %v423_v30 = vor.u32 8388608, %v422_v25 }
  0x6e   :  { %v74_v27 = vpop.permute.xlu2 %73 }
  0x6f   :  { %v425_v28 = vadd.s32 1, %v2949_v26  ;;  %v3253_v29 = vmul.f32 %v3243_v19, %v74_v27  ;;  %v3257_v36 = vshll.u32 %v423_v30, 8 }
  0x71   :  { %4533 = vst [vmem:[#allocation9_spill] sm:$0xff] %v3253_v29  ;;  %vm426_vm0 = vcmp.gt.s32.totalorder %v425_v28, 0  ;;  %v569_v32 = vand.u32 2147483647, %v3253_v29  ;;  %v572_v33 = vand.u32 2139095040, %v3253_v29  ;;  %v464_v11 = vand.u32 65535, %v3257_v36 }
  0x72   :  { %v427_v31 = vsel %vm426_vm0, %v425_v28, 0  ;;  %v465_v12 = vshrl.u32 %v3257_v36, 16 }
  0x73   :  { %v428_v34 = vshrl.u32 %v427_v31, 5  ;;  %v429_v35 = vand.u32 31, %v427_v31  ;;  %v573_v37 = vshrl.u32 %v572_v33, 23  ;;  %v576_v49 = vand.u32 8388607, %v569_v32 }
  0x75   :  { %v430_v38 = vsub.s32 32, %v429_v35  ;;  %v432_v40 = vshll.u32 %v4522_v39, %v429_v35  ;;  %v435_v42 = vshll.u32 %v4520_v41, %v429_v35  ;;  %v438_v44 = vshll.u32 %v4518_v43, %v429_v35 }
  0x76   :  { %v441_v46 = vshll.u32 %v4516_v45, %v429_v35  ;;  %v444_v48 = vshll.u32 %v4513_v47, %v429_v35  ;;  %vm447_vm1 = vcmp.lt.s32.totalorder %v428_v34, 1  ;;  %vm448_vm2 = vcmp.lt.s32.totalorder %v428_v34, 2 }
  0x77   :  { %v431_v50 = vshrl.u32 %v4522_v39, %v430_v38  ;;  %v433_v51 = vshrl.u32 %v4520_v41, %v430_v38  ;;  %v436_v52 = vshrl.u32 %v4518_v43, %v430_v38  ;;  %v439_v53 = vshrl.u32 %v4516_v45, %v430_v38 }
  0x78   :  { %v442_v54 = vshrl.u32 %v4513_v47, %v430_v38  ;;  %v445_v56 = vshrl.u32 %v4511_v55, %v430_v38  ;;  %vm450_vm3 = vcmp.lt.s32.totalorder %v428_v34, 4  ;;  %v2952_v60 = vadd.s32 4294967169, %v573_v37 }
  0x79   :  { %v434_v57 = vor.u32 %v433_v51, %v432_v40  ;;  %v437_v58 = vor.u32 %v436_v52, %v435_v42  ;;  %v440_v59 = vor.u32 %v439_v53, %v438_v44  ;;  %vm449_vm4 = vcmp.lt.s32.totalorder %v428_v34, 3 }
  0x7a   :  { %v443_v61 = vor.u32 %v442_v54, %v441_v46  ;;  %v446_v62 = vor.u32 %v445_v56, %v444_v48  ;;  %v577_v63 = vor.u32 8388608, %v576_v49  ;;  %v579_v8 = vadd.s32 1, %v2952_v60 }
  0x7b   :  { %v451_v0 = vsel %vm447_vm1, %v431_v50, %v434_v57  ;;  %v452_v1 = vsel %vm450_vm3, %v440_v59, 2102212464  ;;  %v455_v2 = vsel %vm447_vm1, %v434_v57, %v437_v58  ;;  %v459_v3 = vsel %vm447_vm1, %v437_v58, %v440_v59 }
  0x7c   :  { %v453_v5 = vsel %vm449_vm4, %v437_v58, %v452_v1  ;;  %v456_v6 = vsel %vm450_vm3, %v443_v61, 920167782  ;;  %v460_v7 = vsel %vm450_vm3, %v446_v62, 1326507024  ;;  %vm580_vm5 = vcmp.gt.s32.totalorder %v579_v8, 0 }
  0x7d   :  { %v457_v9 = vsel %vm449_vm4, %v440_v59, %v456_v6  ;;  %v461_v10 = vsel %vm449_vm4, %v443_v61, %v460_v7  ;;  %v3278_v13 = vsel %vm448_vm2, %v451_v0, %v453_v5  ;;  %v3282_v23 = vshll.u32 %v577_v63, 8 }
  0x7e   :  { %v458_v14 = vsel %vm448_vm2, %v455_v2, %v457_v9  ;;  %v462_v15 = vsel %vm448_vm2, %v459_v3, %v461_v10  ;;  %v508_v27 = vmul.u32 %v3257_v36, %v3278_v13  ;;  %v581_v33 = vsel %vm580_vm5, %v579_v8, 0 }
  0x7f   :  { %v466_v16 = vand.u32 65535, %v462_v15  ;;  %v467_v17 = vshrl.u32 %v462_v15, 16  ;;  %v488_v18 = vand.u32 65535, %v458_v14  ;;  %v489_v20 = vshrl.u32 %v458_v14, 16 }
  0x80   :  { %v583_v50 = vand.u32 31, %v581_v33  ;;  %v3289_v60 = vshrl.u32 %v581_v33, 5 }
  0x81   :  { %v468_v24 = vmul.u32 %v466_v16, %v464_v11  ;;  %v469_v25 = vmul.u32 %v467_v17, %v464_v11  ;;  %v470_v26 = vmul.u32 %v466_v16, %v465_v12  ;;  %v490_v28 = vmul.u32 %v488_v18, %v464_v11 }
  0x82   :  { %v491_v30 = vmul.u32 %v489_v20, %v464_v11  ;;  %v492_v31 = vmul.u32 %v488_v18, %v465_v12  ;;  %v471_v35 = vmul.u32 %v467_v17, %v465_v12  ;;  %v493_v38 = vmul.u32 %v489_v20, %v465_v12 }
  0x83   :  { %v472_v34 = vshll.u32 %v469_v25, 16  ;;  %v474_v37 = vshll.u32 %v470_v26, 16  ;;  %v473_v40 = vshrl.u32 %v469_v25, 16  ;;  %v475_v42 = vshrl.u32 %v470_v26, 16  ;;  %v89_v26 = vpop.permute.xlu0 %88 }
  0x84   :  { %v494_v44 = vshll.u32 %v491_v30, 16  ;;  %v496_v46 = vshll.u32 %v492_v31, 16  ;;  %v495_v49 = vshrl.u32 %v491_v30, 16  ;;  %v497_v52 = vshrl.u32 %v492_v31, 16 }
  0x85   :  { %vm476_vm6 = vc.u32 %v468_v24, %v472_v34  ;;  %v478_v48 = vadd.s32 %v472_v34, %v468_v24  ;;  %v584_v57 = vsub.s32 32, %v583_v50  ;;  %v586_v0 = vshll.u32 %v4522_v39, %v583_v50 }
  0x86   :  { %v477_v51 = vsel %vm476_vm6, 1, %v4524_v4  ;;  %vm498_vm7 = vc.u32 %v490_v28, %v494_v44  ;;  %v500_v53 = vadd.s32 %v494_v44, %v490_v28  ;;  %v589_v3 = vshll.u32 %v4520_v41, %v583_v50 }
  0x87   :  { %v479_v54 = vadd.s32 %v477_v51, %v471_v35  ;;  %vm480_vm8 = vc.u32 %v478_v48, %v474_v37  ;;  %v499_v56 = vsel %vm498_vm7, 1, %v4524_v4  ;;  %v587_v2 = vshrl.u32 %v4520_v41, %v584_v57 }
  0x88   :  { %v481_v58 = vsel %vm480_vm8, 1, %v4524_v4  ;;  %v501_v59 = vadd.s32 %v499_v56, %v493_v38  ;;  %vm502_vm9 = vc.u32 %v500_v53, %v496_v46  ;;  %v3292_v63 = vadd.s32 %v500_v53, %v496_v46 }
  0x89   :  { %v483_v61 = vadd.s32 %v481_v58, %v479_v54  ;;  %v503_v62 = vsel %vm502_vm9, 1, %v4524_v4  ;;  %v590_v5 = vshrl.u32 %v4518_v43, %v584_v57  ;;  %v592_v7 = vshll.u32 %v4518_v43, %v583_v50 }
  0x8a   :  { %v505_v1 = vadd.s32 %v503_v62, %v501_v59  ;;  %v593_v8 = vshrl.u32 %v4516_v45, %v584_v57  ;;  %v595_v9 = vshll.u32 %v4516_v45, %v583_v50  ;;  %v588_v11 = vor.u32 %v587_v2, %v586_v0 }
  0x8b   :  { %v484_v6 = vadd.s32 %v483_v61, %v473_v40  ;;  %v3301_v12 = vor.u32 %v590_v5, %v589_v3  ;;  %v596_v14 = vshrl.u32 %v4513_v47, %v584_v57  ;;  %v598_v17 = vshll.u32 %v4513_v47, %v583_v50 }
  0x8c   :  { %v506_v10 = vadd.s32 %v505_v1, %v495_v49  ;;  %v594_v16 = vor.u32 %v593_v8, %v592_v7  ;;  %v599_v18 = vshrl.u32 %v4511_v55, %v584_v57  ;;  %vm601_vm10 = vcmp.lt.s32.totalorder %v3289_v60, 1 }
  0x8d   :  { %v3304_v15 = vadd.s32 %v484_v6, %v475_v42  ;;  %v597_v24 = vor.u32 %v596_v14, %v595_v9  ;;  %v618_v25 = vand.u32 65535, %v3282_v23  ;;  %vm603_vm12 = vcmp.lt.s32.totalorder %v3289_v60, 3 }
  0x8e   :  { %v507_v20 = vadd.s32 %v506_v10, %v497_v52  ;;  %v600_v28 = vor.u32 %v599_v18, %v598_v17  ;;  %v619_v30 = vshrl.u32 %v3282_v23, 16  ;;  %vm602_vm13 = vcmp.lt.s32.totalorder %v3289_v60, 2 }
  0x8f   :  { %vm510_vm11 = vc.u32 %v3304_v15, %v3292_v63  ;;  %vm604_vm14 = vcmp.lt.s32.totalorder %v3289_v60, 4  ;;  %v609_v33 = vsel %vm601_vm10, %v588_v11, %v3301_v12  ;;  %v613_v34 = vsel %vm601_vm10, %v3301_v12, %v594_v16 }
  0x90   :  { %v511_v31 = vadd.s32 1, %v507_v20  ;;  %v610_v35 = vsel %vm604_vm14, %v597_v24, 920167782  ;;  %v614_v37 = vsel %vm604_vm14, %v600_v28, 1326507024  ;;  %v3327_v38 = vmul.f32 %v3243_v19, %v89_v26 }
  0x91   :  { %v585_v42 = vshrl.u32 %v4522_v39, %v584_v57  ;;  %v611_v44 = vsel %vm603_vm12, %v594_v16, %v610_v35  ;;  %v615_v46 = vsel %vm603_vm12, %v597_v24, %v614_v37  ;;  %v606_v1 = vsel %vm604_vm14, %v594_v16, 2102212464 }
  0x92   :  { %v512_v40 = vsel %vm510_vm11, %v511_v31, %v507_v20  ;;  %v612_v49 = vsel %vm602_vm13, %v609_v33, %v611_v44  ;;  %v616_v50 = vsel %vm602_vm13, %v613_v34, %v615_v46  ;;  %v1031_v57 = vand.u32 2147483647, %v3327_v38  ;;  %v79_v34 = vpop.permute.xlu1 %78 }
  0x93   :  { %v513_v48 = vadd.s32 %v512_v40, %v508_v27  ;;  %v620_v51 = vand.u32 65535, %v616_v50  ;;  %v621_v52 = vshrl.u32 %v616_v50, 16  ;;  %v642_v53 = vand.u32 65535, %v612_v49 }
  0x94   :  { %v643_v54 = vshrl.u32 %v612_v49, 16  ;;  %v605_v58 = vsel %vm601_vm10, %v585_v42, %v588_v11  ;;  %v1038_v44 = vand.u32 8388607, %v1031_v57  ;;  %v509_v60 = vadd.s32 %v3292_v63, %v3304_v15 }
  0x95   :  { %v514_v56 = vadd.s32 536870912, %v513_v48  ;;  %v622_v59 = vmul.u32 %v620_v51, %v618_v25  ;;  %v623_v61 = vmul.u32 %v621_v52, %v618_v25  ;;  %v624_v36 = vmul.u32 %v620_v51, %v619_v30 }
  0x96   :  { %v644_v27 = vmul.u32 %v642_v53, %v618_v25  ;;  %v645_v62 = vmul.u32 %v643_v54, %v618_v25  ;;  %v646_v0 = vmul.u32 %v642_v53, %v619_v30  ;;  %v625_v2 = vmul.u32 %v621_v52, %v619_v30 }
  0x97   :  { %v3344_v13 = vshrl.u32 %v514_v56, 30  ;;  %v626_v3 = vshll.u32 %v623_v61, 16  ;;  %v628_v5 = vshll.u32 %v624_v36, 16  ;;  %v627_v7 = vshrl.u32 %v623_v61, 16 }
  0x98   :  { %v647_v8 = vmul.u32 %v643_v54, %v619_v30  ;;  %v648_v9 = vshll.u32 %v645_v62, 16  ;;  %v629_v10 = vshrl.u32 %v624_v36, 16  ;;  %v650_v14 = vshll.u32 %v646_v0, 16 }
  0x99   :  { %v516_v6 = vshll.u32 %v3344_v13, 30  ;;  %vm630_vm15 = vc.u32 %v622_v59, %v626_v3  ;;  %v632_v11 = vadd.s32 %v626_v3, %v622_v59  ;;  %v1034_v25 = vand.u32 2139095040, %v3327_v38 }
  0x9a   :  { %v631_v18 = vsel %vm630_vm15, 1, %v4524_v4  ;;  %vm652_vm0 = vc.u32 %v644_v27, %v648_v9  ;;  %v654_v20 = vadd.s32 %v648_v9, %v644_v27  ;;  %v649_v33 = vshrl.u32 %v645_v62, 16 }
  0x9b   :  { %v3349_v17 = vsub.s32 %v513_v48, %v516_v6  ;;  %v633_v24 = vadd.s32 %v631_v18, %v625_v2  ;;  %vm634_vm1 = vc.u32 %v632_v11, %v628_v5  ;;  %v653_v16 = vsel %vm652_vm0, 1, %v4524_v4 }
  0x9c   :  { %v635_v28 = vsel %vm634_vm1, 1, %v4524_v4  ;;  %v655_v30 = vadd.s32 %v653_v16, %v647_v8  ;;  %vm656_vm3 = vc.u32 %v654_v20, %v650_v14  ;;  %v1035_v35 = vshrl.u32 %v1034_v25, 23 }
  0x9d   :  { %vm518_vm2 = vcmp.lt.s32.totalorder %v3349_v17, 0  ;;  %v519_v26 = vsub.s32 0, %v3349_v17  ;;  %v637_v31 = vadd.s32 %v635_v28, %v633_v24  ;;  %v651_v40 = vshrl.u32 %v646_v0, 16 }
  0x9e   :  { %v657_v42 = vsel %vm656_vm3, 1, %v4524_v4  ;;  %v2961_v50 = vadd.s32 4294967169, %v1035_v35  ;;  %v607_v51 = vsel %vm603_vm12, %v3301_v12, %v606_v1  ;;  %v658_v52 = vadd.s32 %v654_v20, %v650_v14 }
  0x9f   :  { %v520_v37 = vsel %vm518_vm2, %v519_v26, %v3349_v17  ;;  %v638_v48 = vadd.s32 %v637_v31, %v627_v7  ;;  %v659_v49 = vadd.s32 %v657_v42, %v655_v30  ;;  %v1039_v53 = vor.u32 8388608, %v1038_v44 }
  0xa0   :  { %v521_v46 = vclz %v520_v37  ;;  %v3365_v54 = vmul.f32 %v3243_v19, %v79_v34  ;;  %v1041_v36 = vadd.s32 1, %v2961_v50  ;;  %v608_v27 = vsel %vm602_vm13, %v605_v58, %v607_v51 }
  0xa1   :  { %v639_v59 = vadd.s32 %v638_v48, %v629_v10  ;;  %v660_v61 = vadd.s32 %v659_v49, %v649_v33  ;;  %v3370_v3 = vshll.u32 %v1039_v53, 8  ;;  %v662_v7 = vmul.u32 %v3282_v23, %v608_v27 }
  0xa2   :  { %v2950_v56 = vadd.s32 4294967294, %v521_v46  ;;  %vm1042_vm6 = vcmp.gt.s32.totalorder %v1041_v36, 0  ;;  %v723_v2 = vand.u32 2147483647, %v3365_v54  ;;  %v726_v5 = vand.u32 2139095040, %v3365_v54 }
  0xa3   :  { %v661_v62 = vadd.s32 %v660_v61, %v651_v40  ;;  %vm664_vm5 = vc.u32 %v639_v59, %v658_v52  ;;  %v1043_v8 = vsel %vm1042_vm6, %v1041_v36, 0  ;;  %v3376_v14 = vadd.s32 %v658_v52, %v639_v59 }
  0xa4   :  { %vm2951_vm4 = vcmp.lt.s32.totalorder %v2950_v56, 0  ;;  %v1045_v11 = vand.u32 31, %v1043_v8  ;;  %v3379_v18 = vand.u32 65535, %v3370_v3  ;;  %v727_v20 = vshrl.u32 %v726_v5, 23 }
  0xa5   :  { %v524_v0 = vsel %vm2951_vm4, 0, %v2950_v56  ;;  %v665_v1 = vadd.s32 1, %v661_v62  ;;  %v730_v24 = vand.u32 8388607, %v723_v2  ;;  %v3384_v30 = vshrl.u32 %v1043_v8, 5 }
  0xa6   :  { %v529_v12 = vsub.s32 4294967266, %v524_v0  ;;  %v525_v6 = vsub.s32 32, %v524_v0  ;;  %v526_v16 = vshll.u32 %v3349_v17, %v524_v0  ;;  %v1046_v26 = vsub.s32 32, %v1045_v11 }
  0xa7   :  { %v666_v10 = vsel %vm664_vm5, %v665_v1, %v661_v62  ;;  %v1048_v63 = vshll.u32 %v4522_v39, %v1045_v11  ;;  %v1051_v15 = vshll.u32 %v4520_v41, %v1045_v11  ;;  %v1054_v34 = vshll.u32 %v4518_v43, %v1045_v11 }
  0xa8   :  { %v530_v9 = vadd.s32 127, %v529_v12  ;;  %v667_v58 = vadd.s32 %v666_v10, %v662_v7  ;;  %v527_v23 = vshrl.u32 %v509_v60, %v525_v6  ;;  %v1049_v33 = vshrl.u32 %v4520_v41, %v1046_v26 }
  0xa9   :  { %v1052_v35 = vshrl.u32 %v4518_v43, %v1046_v26  ;;  %v1055_v17 = vshrl.u32 %v4516_v45, %v1046_v26  ;;  %v1057_v37 = vshll.u32 %v4516_v45, %v1045_v11  ;;  %v1058_v40 = vshrl.u32 %v4513_v47, %v1046_v26 }
  0xaa   :  { %v668_v25 = vadd.s32 536870912, %v667_v58  ;;  %v531_v28 = vshll.u32 %v530_v9, 23  ;;  %v1060_v42 = vshll.u32 %v4513_v47, %v1045_v11  ;;  %v1050_v46 = vor.u32 %v1049_v33, %v1048_v63 }
  0xab   :  { %v1053_v48 = vor.u32 %v1052_v35, %v1051_v15  ;;  %v1061_v49 = vshrl.u32 %v4511_v55, %v1046_v26  ;;  %v1056_v50 = vor.u32 %v1055_v17, %v1054_v34  ;;  %v1059_v51 = vor.u32 %v1058_v40, %v1057_v37 }
  0xac   :  { %v3388_v31 = vshrl.u32 %v668_v25, 30  ;;  %vm1063_vm7 = vcmp.lt.s32.totalorder %v3384_v30, 1  ;;  %v2955_v52 = vadd.s32 4294967169, %v727_v20  ;;  %v532_v53 = vor.u32 4788187, %v531_v28 }
  0xad   :  { %v1062_v59 = vor.u32 %v1061_v49, %v1060_v42  ;;  %vm1066_vm8 = vcmp.lt.s32.totalorder %v3384_v30, 4  ;;  %v528_v61 = vor.u32 %v527_v23, %v526_v16  ;;  %vm1065_vm9 = vcmp.lt.s32.totalorder %v3384_v30, 3 }
  0xae   :  { %v670_v44 = vshll.u32 %v3388_v31, 30  ;;  %v1071_v36 = vsel %vm1063_vm7, %v1050_v46, %v1053_v48  ;;  %v1072_v27 = vsel %vm1066_vm8, %v1059_v51, 920167782  ;;  %vm1064_vm11 = vcmp.lt.s32.totalorder %v3384_v30, 2 }
  0xaf   :  { %v1073_v0 = vsel %vm1065_vm9, %v1056_v50, %v1072_v27  ;;  %v1075_v1 = vsel %vm1063_vm7, %v1053_v48, %v1056_v50  ;;  %v1081_v5 = vshrl.u32 %v3370_v3, 16  ;;  %v731_v6 = vor.u32 8388608, %v730_v24 }
  0xb0   :  { %v3400_v56 = vsub.s32 %v667_v58, %v670_v44  ;;  %v1074_v12 = vsel %vm1064_vm11, %v1071_v36, %v1073_v0  ;;  %v533_v7 = vand.u32 2147483647, %v532_v53  ;;  %v1076_v9 = vsel %vm1066_vm8, %v1062_v59, 1326507024 }
  0xb1   :  { %v1104_v10 = vand.u32 65535, %v1074_v12  ;;  %v1077_v58 = vsel %vm1065_vm9, %v1059_v51, %v1076_v9  ;;  %v1105_v11 = vshrl.u32 %v1074_v12, 16  ;;  %v733_v20 = vadd.s32 1, %v2955_v52 }
  0xb2   :  { %vm672_vm10 = vcmp.lt.s32.totalorder %v3400_v56, 0  ;;  %v673_v62 = vsub.s32 0, %v3400_v56  ;;  %v535_v16 = vcvt.s32.f32 %v528_v61  ;;  %v1047_v23 = vshrl.u32 %v4522_v39, %v1046_v26 }
  0xb3   :  { %v1068_v25 = vsel %vm1066_vm8, %v1056_v50, 2102212464  ;;  %v1078_v24 = vsel %vm1064_vm11, %v1075_v1, %v1077_v58  ;;  %v1107_v33 = vmul.u32 %v1105_v11, %v3379_v18  ;;  %v1108_v17 = vmul.u32 %v1104_v10, %v1081_v5 }
  0xb4   :  { %v674_v8 = vsel %vm672_vm10, %v673_v62, %v3400_v56  ;;  %v1082_v63 = vand.u32 65535, %v1078_v24  ;;  %v1083_v15 = vshrl.u32 %v1078_v24, 16  ;;  %v3429_v35 = vmul.f32 %v535_v16, %v533_v7 }
  0xb5   :  { %v675_v60 = vclz %v674_v8  ;;  %v1067_v34 = vsel %vm1063_vm7, %v1047_v23, %v1050_v46  ;;  %v3433_v37 = vshll.u32 %v731_v6, 8  ;;  %v1069_v26 = vsel %vm1065_vm9, %v1053_v48, %v1068_v25 }
  0xb6   :  { %v1085_v40 = vmul.u32 %v1083_v15, %v3379_v18  ;;  %v1086_v42 = vmul.u32 %v1082_v63, %v1081_v5  ;;  %v1106_v49 = vmul.u32 %v1104_v10, %v3379_v18  ;;  %v1109_v50 = vmul.u32 %v1105_v11, %v1081_v5 }
  0xb7   :  { %v2953_v28 = vadd.s32 4294967294, %v675_v60  ;;  %v1110_v51 = vshll.u32 %v1107_v33, 16  ;;  %v1084_v59 = vmul.u32 %v1082_v63, %v3379_v18  ;;  %v1087_v61 = vmul.u32 %v1083_v15, %v1081_v5 }
  0xb8   :  { %v1088_v46 = vshll.u32 %v1085_v40, 16  ;;  %v1112_v36 = vshll.u32 %v1108_v17, 16  ;;  %vm734_vm14 = vcmp.gt.s32.totalorder %v733_v20, 0  ;;  %v1090_v62 = vshll.u32 %v1086_v42, 16 }
  0xb9   :  { %vm2954_vm12 = vcmp.lt.s32.totalorder %v2953_v28, 0  ;;  %vm1114_vm13 = vc.u32 %v1106_v49, %v1110_v51  ;;  %v1116_v6 = vadd.s32 %v1110_v51, %v1106_v49  ;;  %v735_v18 = vsel %vm734_vm14, %v733_v20, 0 }
  0xba   :  { %v678_v44 = vsel %vm2954_vm12, 0, %v2953_v28  ;;  %vm1092_vm15 = vc.u32 %v1084_v59, %v1088_v46  ;;  %v1094_v48 = vadd.s32 %v1088_v46, %v1084_v59  ;;  %v1115_v1 = vsel %vm1114_vm13, 1, %v4524_v4 }
  0xbb   :  { %v679_v52 = vsub.s32 32, %v678_v44  ;;  %v683_v53 = vsub.s32 4294967266, %v678_v44  ;;  %v1093_v12 = vsel %vm1092_vm15, 1, %v4524_v4  ;;  %v680_v5 = vshll.u32 %v3400_v56, %v678_v44 }
  0xbc   :  { %v1095_v8 = vadd.s32 %v1093_v12, %v1087_v61  ;;  %vm1096_vm0 = vc.u32 %v1094_v48, %v1090_v62  ;;  %v1117_v10 = vadd.s32 %v1115_v1, %v1109_v50  ;;  %vm1118_vm1 = vc.u32 %v1116_v6, %v1112_v36  ;;  %v94_v62 = vpop.permute.xlu0 %93 }
  0xbd   :  { %v684_v27 = vadd.s32 127, %v683_v53  ;;  %v681_v0 = vshrl.u32 %v3376_v14, %v679_v52  ;;  %v1097_v9 = vsel %vm1096_vm0, 1, %v4524_v4  ;;  %v1089_v58 = vshrl.u32 %v1085_v40, 16 }
  0xbe   :  { %v1099_v11 = vadd.s32 %v1097_v9, %v1095_v8  ;;  %v1119_v14 = vsel %vm1118_vm1, 1, %v4524_v4  ;;  %v1070_v16 = vsel %vm1064_vm11, %v1067_v34, %v1069_v26  ;;  %v1111_v23 = vshrl.u32 %v1107_v33, 16 }
  0xbf   :  { %v685_v7 = vshll.u32 %v684_v27, 23  ;;  %v1121_v25 = vadd.s32 %v1119_v14, %v1117_v10  ;;  %v737_v24 = vand.u32 31, %v735_v18  ;;  %v682_v28 = vor.u32 %v681_v0, %v680_v5 }
  0xc0   :  { %v1091_v63 = vshrl.u32 %v1086_v42, 16  ;;  %v1100_v20 = vadd.s32 %v1099_v11, %v1089_v58  ;;  %v1113_v15 = vshrl.u32 %v1108_v17, 16  ;;  %v3452_v52 = vadd.s32 %v1116_v6, %v1112_v36 }
  0xc1   :  { %v686_v60 = vor.u32 4788187, %v685_v7  ;;  %v1122_v56 = vadd.s32 %v1121_v25, %v1111_v23  ;;  %v738_v44 = vsub.s32 32, %v737_v24  ;;  %v740_v49 = vshll.u32 %v4522_v39, %v737_v24 }
  0xc2   :  { %v743_v50 = vshll.u32 %v4520_v41, %v737_v24  ;;  %v3450_v51 = vadd.s32 %v1100_v20, %v1091_v63  ;;  %v746_v30 = vshll.u32 %v4518_v43, %v737_v24  ;;  %v749_v17 = vshll.u32 %v4516_v45, %v737_v24 }
  0xc3   :  { %v687_v40 = vand.u32 2147483647, %v686_v60  ;;  %v1123_v33 = vadd.s32 %v1122_v56, %v1113_v15  ;;  %v741_v34 = vshrl.u32 %v4520_v41, %v738_v44  ;;  %v744_v26 = vshrl.u32 %v4518_v43, %v738_v44 }
  0xc4   :  { %v689_v42 = vcvt.s32.f32 %v682_v28  ;;  %vm1126_vm2 = vc.u32 %v3450_v51, %v3452_v52  ;;  %v3460_v53 = vshrl.u32 %v735_v18, 5  ;;  %v747_v59 = vshrl.u32 %v4516_v45, %v738_v44 }
  0xc5   :  { %vm417_vm3 = vcmp.lt.s32.totalorder %v3246_v21, 0  ;;  %v1127_v46 = vadd.s32 1, %v1123_v33  ;;  %v742_v61 = vor.u32 %v741_v34, %v740_v49  ;;  %v3464_v36 = vor.u32 %v744_v26, %v743_v50 }
  0xc6   :  { %v750_v27 = vshrl.u32 %v4513_v47, %v738_v44  ;;  %v1124_v48 = vmul.u32 %v3370_v3, %v1070_v16  ;;  %v748_v0 = vor.u32 %v747_v59, %v746_v30  ;;  %v752_v12 = vshll.u32 %v4513_v47, %v737_v24 }
  0xc7   :  { %v753_v1 = vshrl.u32 %v4511_v55, %v738_v44  ;;  %vm571_vm4 = vcmp.lt.s32.totalorder %v3253_v29, 0  ;;  %v690_v6 = vmul.f32 %v689_v42, %v687_v40  ;;  %v1128_v7 = vsel %vm1126_vm2, %v1127_v46, %v1123_v33 }
  0xc8   :  { %v751_v8 = vor.u32 %v750_v27, %v749_v17  ;;  %v1129_v18 = vadd.s32 %v1128_v7, %v1124_v48  ;;  %vm755_vm5 = vcmp.lt.s32.totalorder %v3460_v53, 1  ;;  %v3473_v9 = vmul.f32 %v3243_v19, %v94_v62 }
  0xc9   :  { %v754_v5 = vor.u32 %v753_v1, %v752_v12  ;;  %v537_v10 = vxor.u32 2147483648, %v3429_v35  ;;  %vm758_vm6 = vcmp.lt.s32.totalorder %v3460_v53, 4  ;;  %v763_v3 = vsel %vm755_vm5, %v742_v61, %v3464_v36 }
  0xca   :  { %v772_v60 = vand.u32 65535, %v3433_v37  ;;  %v1130_v58 = vadd.s32 536870912, %v1129_v18  ;;  %vm757_vm7 = vcmp.lt.s32.totalorder %v3460_v53, 3  ;;  %v764_v11 = vsel %vm758_vm6, %v751_v8, 920167782 }
  0xcb   :  { %v767_v14 = vsel %vm755_vm5, %v3464_v36, %v748_v0  ;;  %v691_v16 = vxor.u32 2147483648, %v690_v6  ;;  %vm756_vm8 = vcmp.lt.s32.totalorder %v3460_v53, 2  ;;  %v765_v23 = vsel %vm757_vm7, %v748_v0, %v764_v11 }
  0xcc   :  { %v768_v25 = vsel %vm758_vm6, %v754_v5, 1326507024  ;;  %v3492_v24 = vshrl.u32 %v1130_v58, 30  ;;  %v739_v28 = vshrl.u32 %v4522_v39, %v738_v44  ;;  %v766_v63 = vsel %vm756_vm8, %v763_v3, %v765_v23 }
  0xcd   :  { %v769_v20 = vsel %vm757_vm7, %v751_v8, %v768_v25  ;;  %v773_v56 = vshrl.u32 %v3433_v37, 16  ;;  %v796_v49 = vand.u32 65535, %v766_v63  ;;  %v797_v50 = vshrl.u32 %v766_v63, 16 }
  0xce   :  { %v770_v15 = vsel %vm756_vm8, %v767_v14, %v769_v20  ;;  %v538_v40 = vsel %vm417_vm3, %v537_v10, %v3429_v35  ;;  %v1132_v30 = vshll.u32 %v3492_v24, 30  ;;  %v692_v34 = vsel %vm571_vm4, %v691_v16, %v690_v6 }
  0xcf   :  { %v774_v44 = vand.u32 65535, %v770_v15  ;;  %v775_v33 = vshrl.u32 %v770_v15, 16  ;;  %v799_v26 = vmul.u32 %v797_v50, %v772_v60  ;;  %v800_v17 = vmul.u32 %v796_v49, %v773_v56 }
  0xd0   :  { %v1185_v42 = vand.u32 2147483647, %v3473_v9  ;;  %v3509_v59 = vsub.s32 %v1129_v18, %v1132_v30  ;;  %v759_v46 = vsel %vm755_vm5, %v739_v28, %v742_v61  ;;  %v760_v35 = vsel %vm758_vm6, %v748_v0, 2102212464 }
  0xd1   :  { %v777_v27 = vmul.u32 %v775_v33, %v772_v60  ;;  %v778_v62 = vmul.u32 %v774_v44, %v773_v56  ;;  %v798_v48 = vmul.u32 %v796_v49, %v772_v60  ;;  %v801_v12 = vmul.u32 %v797_v50, %v773_v56 }
  0xd2   :  { %v802_v1 = vshll.u32 %v799_v26, 16  ;;  %vm1134_vm9 = vcmp.lt.s32.totalorder %v3509_v59, 0  ;;  %v1135_v6 = vsub.s32 0, %v3509_v59  ;;  %v776_v7 = vmul.u32 %v774_v44, %v772_v60 }
  0xd3   :  { %v780_v8 = vshll.u32 %v777_v27, 16  ;;  %v779_v5 = vmul.u32 %v775_v33, %v773_v56  ;;  %v782_v18 = vshll.u32 %v778_v62, 16  ;;  %v804_v10 = vshll.u32 %v800_v17, 16 }
  0xd4   :  { %vm806_vm10 = vc.u32 %v798_v48, %v802_v1  ;;  %v1136_v61 = vsel %vm1134_vm9, %v1135_v6, %v3509_v59  ;;  %v808_v14 = vadd.s32 %v802_v1, %v798_v48  ;;  %v1188_v60 = vand.u32 2139095040, %v3473_v9 }
  0xd5   :  { %vm784_vm11 = vc.u32 %v776_v7, %v780_v8  ;;  %v786_v3 = vadd.s32 %v780_v8, %v776_v7  ;;  %v807_v58 = vsel %vm806_vm10, 1, %v4524_v4  ;;  %v1137_v0 = vclz %v1136_v61 }
  0xd6   :  { %v785_v11 = vsel %vm784_vm11, 1, %v4524_v4  ;;  %v809_v16 = vadd.s32 %v807_v58, %v801_v12  ;;  %v1192_v25 = vand.u32 8388607, %v1185_v42  ;;  %v761_v63 = vsel %vm757_vm7, %v3464_v36, %v760_v35 }
  0xd7   :  { %v787_v23 = vadd.s32 %v785_v11, %v779_v5  ;;  %vm788_vm12 = vc.u32 %v786_v3, %v782_v18  ;;  %v2962_v28 = vadd.s32 4294967294, %v1137_v0  ;;  %vm810_vm13 = vc.u32 %v808_v14, %v804_v10 }
  0xd8   :  { %v789_v20 = vsel %vm788_vm12, 1, %v4524_v4  ;;  %v781_v15 = vshrl.u32 %v777_v27, 16  ;;  %v811_v49 = vsel %vm810_vm13, 1, %v4524_v4  ;;  %v1189_v50 = vshrl.u32 %v1188_v60, 23 }
  0xd9   :  { %v791_v56 = vadd.s32 %v789_v20, %v787_v23  ;;  %vm2963_vm14 = vcmp.lt.s32.totalorder %v2962_v28, 0  ;;  %v783_v30 = vshrl.u32 %v778_v62, 16  ;;  %v803_v44 = vshrl.u32 %v799_v26, 16 }
  0xda   :  { %v813_v33 = vadd.s32 %v811_v49, %v809_v16  ;;  %v1140_v48 = vsel %vm2963_vm14, 0, %v2962_v28  ;;  %v2964_v1 = vadd.s32 4294967169, %v1189_v50  ;;  %v1193_v6 = vor.u32 8388608, %v1192_v25 }
  0xdb   :  { %v792_v12 = vadd.s32 %v791_v56, %v781_v15  ;;  %vm3530_vm15 = vcmp.le.f32.partialorder %v415_v22, 0.7853982  ;;  %v1145_v35 = vsub.s32 4294967266, %v1140_v48  ;;  %v805_v27 = vshrl.u32 %v800_v17, 16 }
  0xdc   :  { %v814_v7 = vadd.s32 %v813_v33, %v803_v44  ;;  %vm3536_vm0 = vcmp.le.f32.partialorder %v569_v32, 0.7853982  ;;  %v4536_v8 = vmov 0  ;;  %v812_v62 = vadd.s32 %v808_v14, %v804_v10  ;;  %v84_v10 = vpop.permute.xlu1 %83 }
  0xdd   :  { %v4537_v8 = vsel %vm3536_vm0, 4294967295, %v4536_v8  ;;  %v793_v26 = vadd.s32 %v792_v12, %v783_v30  ;;  %v1195_v5 = vadd.s32 1, %v2964_v1  ;;  %v3543_v18 = vsel %vm3530_vm15, %v3246_v21, %v538_v40 }
  0xde   :  { %4538 = vst [vmem:[#allocation10_spill] sm:$0xff] %v4537_v8  ;;  %v3548_v22 = vsel %vm3536_vm0, %v3253_v29, %v692_v34  ;;  %v762_v17 = vsel %vm756_vm8, %v759_v46, %v761_v63  ;;  %v815_v32 = vadd.s32 %v814_v7, %v805_v27  ;;  %v1141_v61 = vsub.s32 32, %v1140_v48 }
  0xdf   :  { %4539 = vst [vmem:[#allocation11_spill] sm:$0xff] %v3543_v18  ;;  %vm818_vm1 = vc.u32 %v793_v26, %v812_v62  ;;  %vm1196_vm2 = vcmp.gt.s32.totalorder %v1195_v5, 0  ;;  %v3552_v3 = vshll.u32 %v1193_v6, 8  ;;  %v1146_v58 = vadd.s32 127, %v1145_v35 }
  0xe0   :  { %4540 = vst [vmem:[#allocation12_spill] sm:$0xff] %v3548_v22  ;;  %v819_v0 = vadd.s32 1, %v815_v32  ;;  %v1197_v11 = vsel %vm1196_vm2, %v1195_v5, 0  ;;  %v3556_v40 = vmul.f32 %v3543_v18, %v3543_v18  ;;  %v1125_v34 = vadd.s32 %v3452_v52, %v3450_v51 }
  0xe1   :  { %v816_v53 = vmul.u32 %v3433_v37, %v762_v17  ;;  %v1199_v46 = vand.u32 31, %v1197_v11  ;;  %v3563_v14 = vmul.f32 %v3548_v22, %v3548_v22  ;;  %v1142_v16 = vshll.u32 %v3509_v59, %v1140_v48 }
  0xe2   :  { %v820_v23 = vsel %vm818_vm1, %v819_v0, %v815_v32  ;;  %v3567_v60 = vmul.f32 %v3243_v19, %v84_v10  ;;  %v1143_v25 = vshrl.u32 %v1125_v34, %v1141_v61  ;;  %v3570_v20 = vand.u32 65535, %v3552_v3 }
  0xe3   :  { %v821_v28 = vadd.s32 %v820_v23, %v816_v53  ;;  %v1200_v63 = vsub.s32 32, %v1199_v46  ;;  %v1147_v51 = vshll.u32 %v1146_v58, 23  ;;  %v3572_v52 = vshrl.u32 %v1197_v11, 5 }
  0xe4   :  { %v1202_v37 = vshll.u32 %v4522_v39, %v1199_v46  ;;  %v1205_v15 = vshll.u32 %v4520_v41, %v1199_v46  ;;  %v1208_v19 = vshll.u32 %v4518_v43, %v1199_v46  ;;  %v1211_v30 = vshll.u32 %v4516_v45, %v1199_v46 }
  0xe5   :  { %v822_v56 = vadd.s32 536870912, %v821_v28  ;;  %v1203_v59 = vshrl.u32 %v4520_v41, %v1200_v63  ;;  %v1206_v49 = vshrl.u32 %v4518_v43, %v1200_v63  ;;  %v1209_v50 = vshrl.u32 %v4516_v45, %v1200_v63 }
  0xe6   :  { %v1212_v44 = vshrl.u32 %v4513_v47, %v1200_v63  ;;  %v1215_v33 = vshrl.u32 %v4511_v55, %v1200_v63  ;;  %v1214_v6 = vshll.u32 %v4513_v47, %v1199_v46  ;;  %v1148_v35 = vor.u32 4788187, %v1147_v51 }
  0xe7   :  { %v3583_v48 = vshrl.u32 %v822_v56, 30  ;;  %v1204_v12 = vor.u32 %v1203_v59, %v1202_v37  ;;  %v1207_v1 = vor.u32 %v1206_v49, %v1205_v15  ;;  %v1210_v27 = vor.u32 %v1209_v50, %v1208_v19 }
  0xe8   :  { %v1213_v7 = vor.u32 %v1212_v44, %v1211_v30  ;;  %v1235_v5 = vshrl.u32 %v3552_v3, 16  ;;  %v1216_v32 = vor.u32 %v1215_v33, %v1214_v6  ;;  %vm1217_vm5 = vcmp.lt.s32.totalorder %v3572_v52, 1 }
  0xe9   :  { %v824_v17 = vshll.u32 %v3583_v48, 30  ;;  %v4510_v61 = vand.u32 2147483647, %v3567_v60  ;;  %v1144_v10 = vor.u32 %v1143_v25, %v1142_v16  ;;  %v3590_v58 = vadd.s32 %v812_v62, %v793_v26 }
  0xea   :  { %vm1220_vm6 = vcmp.lt.s32.totalorder %v3572_v52, 4  ;;  %v1225_v0 = vsel %vm1217_vm5, %v1204_v12, %v1207_v1  ;;  %vm1219_vm7 = vcmp.lt.s32.totalorder %v3572_v52, 3  ;;  %v880_v53 = vand.u32 2139095040, %v3567_v60 }
  0xeb   :  { %v3595_v11 = vsub.s32 %v821_v28, %v824_v17  ;;  %v1226_v34 = vsel %vm1220_vm6, %v1213_v7, 920167782  ;;  %v1149_v46 = vand.u32 2147483647, %v1148_v35  ;;  %vm1218_vm8 = vcmp.lt.s32.totalorder %v3572_v52, 2 }
  0xec   :  { %v1227_v26 = vsel %vm1219_vm7, %v1210_v27, %v1226_v34  ;;  %v1229_v62 = vsel %vm1217_vm5, %v1207_v1, %v1210_v27  ;;  %v1230_v25 = vsel %vm1220_vm6, %v1216_v32, 1326507024  ;;  %v1151_v28 = vcvt.s32.f32 %v1144_v10 }
  0xed   :  { %vm826_vm9 = vcmp.lt.s32.totalorder %v3595_v11, 0  ;;  %v827_v16 = vsub.s32 0, %v3595_v11  ;;  %v1228_v23 = vsel %vm1218_vm8, %v1225_v0, %v1227_v26  ;;  %v1231_v51 = vsel %vm1219_vm7, %v1213_v7, %v1230_v25 }
  0xee   :  { %v1258_v37 = vand.u32 65535, %v1228_v23  ;;  %v1259_v15 = vshrl.u32 %v1228_v23, 16  ;;  %v1201_v59 = vshrl.u32 %v4522_v39, %v1200_v63  ;;  %v1222_v49 = vsel %vm1220_vm6, %v1210_v27, 2102212464 }
  0xef   :  { %v828_v56 = vsel %vm826_vm9, %v827_v16, %v3595_v11  ;;  %v1232_v19 = vsel %vm1218_vm8, %v1229_v62, %v1231_v51  ;;  %v881_v33 = vshrl.u32 %v880_v53, 23  ;;  %v3620_v6 = vmul.f32 %v1151_v28, %v1149_v46 }
  0xf0   :  { %v829_v50 = vclz %v828_v56  ;;  %v1236_v30 = vand.u32 65535, %v1232_v19  ;;  %v1237_v44 = vshrl.u32 %v1232_v19, 16  ;;  %v1261_v35 = vmul.u32 %v1259_v15, %v3570_v20 }
  0xf1   :  { %v1262_v7 = vmul.u32 %v1258_v37, %v1235_v5  ;;  %v884_v17 = vand.u32 8388607, %v4510_v61  ;;  %v1221_v63 = vsel %vm1217_vm5, %v1201_v59, %v1204_v12  ;;  %v1223_v0 = vsel %vm1219_vm7, %v1207_v1, %v1222_v49 }
  0xf2   :  { %v2956_v32 = vadd.s32 4294967294, %v829_v50  ;;  %v1239_v27 = vmul.u32 %v1237_v44, %v3570_v20  ;;  %v1240_v10 = vmul.u32 %v1236_v30, %v1235_v5  ;;  %v1260_v34 = vmul.u32 %v1258_v37, %v3570_v20 }
  0xf3   :  { %v1263_v53 = vmul.u32 %v1259_v15, %v1235_v5  ;;  %v1264_v46 = vshll.u32 %v1261_v35, 16  ;;  %v1238_v26 = vmul.u32 %v1236_v30, %v3570_v20  ;;  %v2958_v16 = vadd.s32 4294967169, %v881_v33 }
  0xf4   :  { %vm2957_vm10 = vcmp.lt.s32.totalorder %v2956_v32, 0  ;;  %v1242_v62 = vshll.u32 %v1239_v27, 16  ;;  %v1241_v25 = vmul.u32 %v1237_v44, %v1235_v5  ;;  %v1266_v28 = vshll.u32 %v1262_v7, 16 }
  0xf5   :  { %v832_v23 = vsel %vm2957_vm10, 0, %v2956_v32  ;;  %vm1268_vm11 = vc.u32 %v1260_v34, %v1264_v46  ;;  %v1244_v56 = vshll.u32 %v1240_v10, 16  ;;  %v1270_v15 = vadd.s32 %v1264_v46, %v1260_v34 }
  0xf6   :  { %v833_v12 = vsub.s32 32, %v832_v23  ;;  %v837_v51 = vsub.s32 4294967266, %v832_v23  ;;  %vm1246_vm12 = vc.u32 %v1238_v26, %v1242_v62  ;;  %v1248_v1 = vadd.s32 %v1242_v62, %v1238_v26 }
  0xf7   :  { %v1247_v59 = vsel %vm1246_vm12, 1, %v4524_v4  ;;  %v1269_v37 = vsel %vm1268_vm11, 1, %v4524_v4  ;;  %v1224_v20 = vsel %vm1218_vm8, %v1221_v63, %v1223_v0  ;;  %vm1272_vm14 = vc.u32 %v1270_v15, %v1266_v28 }
  0xf8   :  { %v838_v49 = vadd.s32 127, %v837_v51  ;;  %v1249_v19 = vadd.s32 %v1247_v59, %v1241_v25  ;;  %v1271_v50 = vadd.s32 %v1269_v37, %v1263_v53  ;;  %vm1250_vm13 = vc.u32 %v1248_v1, %v1244_v56 }
  0xf9   :  { %v885_v5 = vor.u32 8388608, %v884_v17  ;;  %v887_v30 = vadd.s32 1, %v2958_v16  ;;  %v835_v44 = vshrl.u32 %v3590_v58, %v833_v12  ;;  %v1251_v33 = vsel %vm1250_vm13, 1, %v4524_v4  ;;  %v64_v12 = vpop.permute.xlu1 %63 }
  0xfa   :  { %v1265_v32 = vshrl.u32 %v1261_v35, 16  ;;  %v1273_v26 = vsel %vm1272_vm14, 1, %v4524_v4  ;;  %vm1033_vm1 = vcmp.lt.s32.totalorder %v3327_v38, 0  ;;  %v1243_v34 = vshrl.u32 %v1239_v27, 16 }
  0xfb   :  { %v1253_v46 = vadd.s32 %v1251_v33, %v1249_v19  ;;  %v1275_v62 = vadd.s32 %v1273_v26, %v1271_v50  ;;  %vm888_vm2 = vcmp.gt.s32.totalorder %v887_v30, 0  ;;  %v834_v52 = vshll.u32 %v3595_v11, %v832_v23 }
  0xfc   :  { %v839_v63 = vshll.u32 %v838_v49, 23  ;;  %v1245_v0 = vshrl.u32 %v1240_v10, 16  ;;  %v889_v53 = vsel %vm888_vm2, %v887_v30, 0  ;;  %v1267_v16 = vshrl.u32 %v1262_v7, 16  ;;  %v3651_v7 = vld [vmem:[%s4501_s0] ss:$0 sm:$0xff] }
  0xfd   :  { %v1254_v17 = vadd.s32 %v1253_v46, %v1243_v34  ;;  %v1276_v25 = vadd.s32 %v1275_v62, %v1265_v32  ;;  %v891_v58 = vand.u32 31, %v889_v53  ;;  %v1153_v35 = vxor.u32 2147483648, %v3620_v6 }
  0xfe   :  { %v836_v51 = vor.u32 %v835_v44, %v834_v52  ;;  %v1274_v56 = vadd.s32 %v1270_v15, %v1266_v28  ;;  %v1278_v59 = vmul.u32 %v3552_v3, %v1224_v20  ;;  %v3643_v19 = vshll.u32 %v885_v5, 8 }
  0xff   :  { %v1255_v27 = vadd.s32 %v1254_v17, %v1245_v0  ;;  %v1277_v1 = vadd.s32 %v1276_v25, %v1267_v16  ;;  %v892_v37 = vsub.s32 32, %v891_v58  ;;  %v840_v11 = vor.u32 4788187, %v839_v63 }
 0x100   :  { %v3645_v23 = vshrl.u32 %v889_v53, 5  ;;  %v894_v10 = vshll.u32 %v4522_v39, %v891_v58  ;;  %v3654_v49 = vmul.f32 %v3651_v7, %v64_v12  ;;  %v897_v28 = vshll.u32 %v4520_v41, %v891_v58 }
 0x101   :  { %vm1280_vm5 = vc.u32 %v1255_v27, %v1274_v56  ;;  %v1281_v3 = vadd.s32 1, %v1277_v1  ;;  %v900_v15 = vshll.u32 %v4518_v43, %v891_v58  ;;  %v895_v20 = vshrl.u32 %v4520_v41, %v892_v37 }
 0x102   :  { %v898_v50 = vshrl.u32 %v4518_v43, %v892_v37  ;;  %v901_v5 = vshrl.u32 %v4516_v45, %v892_v37  ;;  %v903_v30 = vshll.u32 %v4516_v45, %v891_v58  ;;  %v904_v33 = vshrl.u32 %v4513_v47, %v892_v37 }
 0x103   :  { %v1282_v44 = vsel %vm1280_vm5, %v1281_v3, %v1277_v1  ;;  %v906_v32 = vshll.u32 %v4513_v47, %v891_v58  ;;  %v907_v26 = vshrl.u32 %v4511_v55, %v892_v37  ;;  %v3668_v34 = vsel %vm1033_vm1, %v1153_v35, %v3620_v6 }
 0x104   :  { %v1283_v46 = vadd.s32 %v1282_v44, %v1278_v59  ;;  %v896_v62 = vor.u32 %v895_v20, %v894_v10  ;;  %v899_v52 = vor.u32 %v898_v50, %v897_v28  ;;  %v841_v63 = vand.u32 2147483647, %v840_v11 }
 0x105   :  { %v902_v0 = vor.u32 %v901_v5, %v900_v15  ;;  %v905_v53 = vor.u32 %v904_v33, %v903_v30  ;;  %v908_v17 = vor.u32 %v907_v26, %v906_v32  ;;  %v843_v16 = vcvt.s32.f32 %v836_v51 }
 0x106   :  { %v1284_v25 = vadd.s32 536870912, %v1283_v46  ;;  %vm909_vm6 = vcmp.lt.s32.totalorder %v3645_v23, 1  ;;  %v926_v58 = vand.u32 65535, %v3643_v19  ;;  %vm912_vm7 = vcmp.lt.s32.totalorder %v3645_v23, 4 }
 0x107   :  { %v917_v12 = vsel %vm909_vm6, %v896_v62, %v899_v52  ;;  %v927_v6 = vshrl.u32 %v3643_v19, 16  ;;  %v4515_v35 = vand.u32 2147483647, %v3654_v49  ;;  %vm911_vm8 = vcmp.lt.s32.totalorder %v3645_v23, 3 }
 0x108   :  { %v3677_v59 = vshrl.u32 %v1284_v25, 30  ;;  %v918_v51 = vsel %vm912_vm7, %v905_v53, 920167782  ;;  %v921_v1 = vsel %vm909_vm6, %v899_v52, %v902_v0  ;;  %v3684_v11 = vmul.f32 %v843_v16, %v841_v63 }
 0x109   :  { %vm910_vm9 = vcmp.lt.s32.totalorder %v3645_v23, 2  ;;  %v919_v10 = vsel %vm911_vm8, %v902_v0, %v918_v51  ;;  %v922_v3 = vsel %vm912_vm7, %v908_v17, 1326507024  ;;  %v893_v15 = vshrl.u32 %v4522_v39, %v892_v37 }
 0x10a   :  { %v1286_v28 = vshll.u32 %v3677_v59, 30  ;;  %v920_v20 = vsel %vm910_vm9, %v917_v12, %v919_v10  ;;  %v923_v50 = vsel %vm911_vm8, %v905_v53, %v922_v3  ;;  %v914_v5 = vsel %vm912_vm7, %v902_v0, 2102212464 }
 0x10b   :  { %v924_v30 = vsel %vm910_vm9, %v921_v1, %v923_v50  ;;  %v950_v44 = vand.u32 65535, %v920_v20  ;;  %v951_v33 = vshrl.u32 %v920_v20, 16  ;;  %v1279_v32 = vadd.s32 %v1274_v56, %v1255_v27 }
 0x10c   :  { %v3701_v26 = vsub.s32 %v1283_v46, %v1286_v28  ;;  %v928_v63 = vand.u32 65535, %v924_v30  ;;  %v929_v17 = vshrl.u32 %v924_v30, 16  ;;  %v845_v37 = vxor.u32 2147483648, %v3684_v11 }
 0x10d   :  { %v913_v16 = vsel %vm909_vm6, %v893_v15, %v896_v62  ;;  %v953_v25 = vmul.u32 %v951_v33, %v926_v58  ;;  %v954_v53 = vmul.u32 %v950_v44, %v927_v6  ;;  %v915_v12 = vsel %vm911_vm8, %v899_v52, %v914_v5 }
 0x10e   :  { %vm1288_vm10 = vcmp.lt.s32.totalorder %v3701_v26, 0  ;;  %v1289_v0 = vsub.s32 0, %v3701_v26  ;;  %v931_v51 = vmul.u32 %v929_v17, %v926_v58  ;;  %v932_v56 = vmul.u32 %v928_v63, %v927_v6 }
 0x10f   :  { %v952_v27 = vmul.u32 %v950_v44, %v926_v58  ;;  %v955_v46 = vmul.u32 %v951_v33, %v927_v6  ;;  %v956_v1 = vshll.u32 %v953_v25, 16  ;;  %v930_v3 = vmul.u32 %v928_v63, %v926_v58 }
 0x110   :  { %v1290_v10 = vsel %vm1288_vm10, %v1289_v0, %v3701_v26  ;;  %v933_v28 = vmul.u32 %v929_v17, %v927_v6  ;;  %v934_v20 = vshll.u32 %v931_v51, 16  ;;  %v936_v15 = vshll.u32 %v932_v56, 16 }
 0x111   :  { %v1291_v62 = vclz %v1290_v10  ;;  %v957_v50 = vshrl.u32 %v953_v25, 16  ;;  %v958_v30 = vshll.u32 %v954_v53, 16  ;;  %vm3713_vm11 = vcmp.le.f32.partialorder %v1031_v57, 0.7853982 }
 0x112   :  { %vm725_vm12 = vcmp.lt.s32.totalorder %v3365_v54, 0  ;;  %vm938_vm13 = vc.u32 %v930_v3, %v934_v20  ;;  %v940_v52 = vadd.s32 %v934_v20, %v930_v3  ;;  %vm960_vm14 = vc.u32 %v952_v27, %v956_v1 }
 0x113   :  { %v962_v5 = vadd.s32 %v956_v1, %v952_v27  ;;  %v2965_v44 = vadd.s32 4294967294, %v1291_v62  ;;  %v939_v58 = vsel %vm938_vm13, 1, %v4524_v4  ;;  %v961_v6 = vsel %vm960_vm14, 1, %v4524_v4 }
 0x114   :  { %v264_v33 = vand.u32 2139095040, %v3654_v49  ;;  %v941_v63 = vadd.s32 %v939_v58, %v933_v28  ;;  %vm942_vm2 = vc.u32 %v940_v52, %v936_v15  ;;  %v963_v17 = vadd.s32 %v961_v6, %v955_v46 }
 0x115   :  { %vm964_vm5 = vc.u32 %v962_v5, %v958_v30  ;;  %vm3723_vm6 = vcmp.le.f32.partialorder %v723_v2, 0.7853982  ;;  %vm2966_vm7 = vcmp.lt.s32.totalorder %v2965_v44, 0  ;;  %v935_v25 = vshrl.u32 %v931_v51, 16 }
 0x116   :  { %v943_v0 = vsel %vm942_vm2, 1, %v4524_v4  ;;  %v965_v27 = vsel %vm964_vm5, 1, %v4524_v4  ;;  %v1294_v1 = vsel %vm2966_vm7, 0, %v2965_v44  ;;  %v265_v20 = vshrl.u32 %v264_v33, 23 }
 0x117   :  { %v945_v10 = vadd.s32 %v943_v0, %v941_v63  ;;  %v967_v3 = vadd.s32 %v965_v27, %v963_v17  ;;  %v1295_v28 = vsub.s32 32, %v1294_v1  ;;  %v1299_v62 = vsub.s32 4294967266, %v1294_v1 }
 0x118   :  { %v937_v46 = vshrl.u32 %v932_v56, 16  ;;  %v959_v15 = vshrl.u32 %v954_v53, 16  ;;  %v2946_v2 = vadd.s32 4294967169, %v265_v20  ;;  %v268_v6 = vand.u32 8388607, %v4515_v35 }
 0x119   :  { %v946_v52 = vadd.s32 %v945_v10, %v935_v25  ;;  %v968_v58 = vadd.s32 %v967_v3, %v957_v50  ;;  %v1296_v51 = vshll.u32 %v3701_v26, %v1294_v1  ;;  %v1297_v55 = vshrl.u32 %v1279_v32, %v1295_v28 }
 0x11a   :  { %v1300_v47 = vadd.s32 127, %v1299_v62  ;;  %v916_v44 = vsel %vm910_vm9, %v913_v16, %v915_v12  ;;  %v966_v17 = vadd.s32 %v962_v5, %v958_v30  ;;  %v271_v0 = vadd.s32 1, %v2946_v2  ;;  %v59_v16 = vpop.permute.xlu0 %58 }
 0x11b   :  { %v947_v63 = vadd.s32 %v946_v52, %v937_v46  ;;  %v969_v33 = vadd.s32 %v968_v58, %v959_v15  ;;  %v3738_v53 = vsel %vm3713_vm11, %v3327_v38, %v3668_v34  ;;  %v846_v56 = vsel %vm725_vm12, %v845_v37, %v3684_v11 }
 0x11c   :  { %v1298_v26 = vor.u32 %v1297_v55, %v1296_v51  ;;  %v1301_v32 = vshll.u32 %v1300_v47, 23  ;;  %v269_v23 = vor.u32 8388608, %v268_v6  ;;  %vm272_vm9 = vcmp.gt.s32.totalorder %v271_v0, 0 }
 0x11d   :  { %vm972_vm8 = vc.u32 %v947_v63, %v966_v17  ;;  %v973_v50 = vadd.s32 1, %v969_v33  ;;  %vm1187_vm10 = vcmp.lt.s32.totalorder %v3473_v9, 0  ;;  %v970_v30 = vmul.u32 %v3643_v19, %v916_v44 }
 0x11e   :  { %v1302_v12 = vor.u32 4788187, %v1301_v32  ;;  %v273_v5 = vsel %vm272_vm9, %v271_v0, 0  ;;  %v3747_v34 = vmul.f32 %v3738_v53, %v3738_v53  ;;  %v3752_v55 = vsel %vm3723_vm6, %v3365_v54, %v846_v56 }
 0x11f   :  { %vm3756_vm13 = vcmp.le.f32.partialorder %v1185_v42, 0.7853982  ;;  %v974_v11 = vsel %vm972_vm8, %v973_v50, %v969_v33  ;;  %v275_v37 = vand.u32 31, %v273_v5  ;;  %v1305_v19 = vcvt.s32.f32 %v1298_v26 }
 0x120   :  { %v1303_v25 = vand.u32 2147483647, %v1302_v12  ;;  %v975_v27 = vadd.s32 %v974_v11, %v970_v30  ;;  %v3761_v1 = vmul.f32 %v3651_v7, %v59_v16  ;;  %v3763_v10 = vshrl.u32 %v273_v5, 5 }
 0x121   :  { %v276_v3 = vsub.s32 32, %v275_v37  ;;  %v278_v20 = vshll.u32 %v4522_v39, %v275_v37  ;;  %v3766_v28 = vshll.u32 %v269_v23, 8  ;;  %v281_v46 = vshll.u32 %v4520_v41, %v275_v37 }
 0x122   :  { %v1306_v62 = vmul.f32 %v1305_v19, %v1303_v25  ;;  %v976_v42 = vadd.s32 536870912, %v975_v27  ;;  %v284_v15 = vshll.u32 %v4518_v43, %v275_v37  ;;  %v287_v2 = vshll.u32 %v4516_v45, %v275_v37 }
 0x123   :  { %v279_v52 = vshrl.u32 %v4520_v41, %v276_v3  ;;  %v282_v58 = vshrl.u32 %v4518_v43, %v276_v3  ;;  %v285_v7 = vshrl.u32 %v4516_v45, %v276_v3  ;;  %v4547_v44 = vmov 920167782  }
 0x124   :  { %v1307_v6 = vxor.u32 2147483648, %v1306_v62  ;;  %v3774_v51 = vshrl.u32 %v976_v42, 30  ;;  %v288_v33 = vshrl.u32 %v4547_v44, %v276_v3  ;;  %v4548_v0 = vmov 1326507024  }
 0x125   :  { %v291_v56 = vshrl.u32 %v4548_v0, %v276_v3  ;;  %v280_v26 = vor.u32 %v279_v52, %v278_v20  ;;  %v283_v32 = vor.u32 %v282_v58, %v281_v46  ;;  %v290_v50 = vshll.u32 %v4547_v44, %v275_v37 }
 0x126   :  { %v4528_v23 = vand.u32 2147483647, %v3761_v1  ;;  %v1308_v16 = vsel %vm1187_vm10, %v1307_v6, %v1306_v62  ;;  %v978_v12 = vshll.u32 %v3774_v51, 30  ;;  %v286_v30 = vor.u32 %v285_v7, %v284_v15 }
 0x127   :  { %v289_v5 = vor.u32 %v288_v33, %v287_v2  ;;  %v971_v11 = vadd.s32 %v966_v17, %v947_v63  ;;  %v292_v25 = vor.u32 %v291_v56, %v290_v50  ;;  %v310_v19 = vand.u32 65535, %v3766_v28 }
 0x128   :  { %v110_v42 = vand.u32 2139095040, %v3761_v1  ;;  %v3788_v20 = vsel %vm3756_vm13, %v3473_v9, %v1308_v16  ;;  %v979_v37 = vsub.s32 %v975_v27, %v978_v12  ;;  %vm293_vm14 = vcmp.lt.s32.totalorder %v3763_v10, 1 }
 0x129   :  { %vm296_vm2 = vcmp.lt.s32.totalorder %v3763_v10, 4  ;;  %vm294_vm5 = vcmp.lt.s32.totalorder %v3763_v10, 2  ;;  %vm295_vm7 = vcmp.lt.s32.totalorder %v3763_v10, 3  ;;  %v301_v63 = vsel %vm293_vm14, %v280_v26, %v283_v32 }
 0x12a   :  { %v302_v17 = vsel %vm296_vm2, %v289_v5, 920167782  ;;  %vm980_vm8 = vcmp.lt.s32.totalorder %v979_v37, 0  ;;  %v981_v62 = vsub.s32 0, %v979_v37  ;;  %v305_v27 = vsel %vm293_vm14, %v283_v32, %v286_v30 }
 0x12b   :  { %v303_v46 = vsel %vm295_vm7, %v286_v30, %v302_v17  ;;  %v298_v15 = vsel %vm296_vm2, %v286_v30, 2102212464  ;;  %v306_v58 = vsel %vm296_vm2, %v292_v25, 1326507024  ;;  %v111_v7 = vshrl.u32 %v110_v42, 23 }
 0x12c   :  { %v304_v52 = vsel %vm294_vm5, %v301_v63, %v303_v46  ;;  %v982_v2 = vsel %vm980_vm8, %v981_v62, %v979_v37  ;;  %v307_v6 = vsel %vm295_vm7, %v289_v5, %v306_v58  ;;  %v277_v16 = vshrl.u32 %v4522_v39, %v276_v3 }
 0x12d   :  { %v334_v33 = vand.u32 65535, %v304_v52  ;;  %v335_v56 = vshrl.u32 %v304_v52, 16  ;;  %v983_v50 = vclz %v982_v2  ;;  %v308_v12 = vsel %vm294_vm5, %v305_v27, %v307_v6 }
 0x12e   :  { %v311_v17 = vshrl.u32 %v3766_v28, 16  ;;  %v3810_v30 = vmul.f32 %v3788_v20, %v3788_v20  ;;  %v312_v25 = vand.u32 65535, %v308_v12  ;;  %v313_v42 = vshrl.u32 %v308_v12, 16 }
 0x12f   :  { %v337_v63 = vmul.u32 %v335_v56, %v310_v19  ;;  %v2959_v62 = vadd.s32 4294967294, %v983_v50  ;;  %v297_v5 = vsel %vm293_vm14, %v277_v16, %v280_v26  ;;  %v299_v46 = vsel %vm295_vm7, %v283_v32, %v298_v15 }
 0x130   :  { %v338_v3 = vmul.u32 %v334_v33, %v311_v17  ;;  %v315_v52 = vmul.u32 %v313_v42, %v310_v19  ;;  %v316_v58 = vmul.u32 %v312_v25, %v311_v17  ;;  %v2943_v27 = vadd.s32 4294967169, %v111_v7 }
 0x131   :  { %v114_v2 = vand.u32 8388607, %v4528_v23  ;;  %vm2960_vm9 = vcmp.lt.s32.totalorder %v2959_v62, 0  ;;  %v336_v6 = vmul.u32 %v334_v33, %v310_v19  ;;  %v339_v35 = vmul.u32 %v335_v56, %v311_v17 }
 0x132   :  { %v340_v45 = vshll.u32 %v337_v63, 16  ;;  %v986_v12 = vsel %vm2960_vm9, 0, %v2959_v62  ;;  %v314_v43 = vmul.u32 %v312_v25, %v310_v19  ;;  %v317_v50 = vmul.u32 %v313_v42, %v311_v17 }
 0x133   :  { %v318_v41 = vshll.u32 %v315_v52, 16  ;;  %v987_v39 = vsub.s32 32, %v986_v12  ;;  %v991_v26 = vsub.s32 4294967266, %v986_v12  ;;  %v320_v16 = vshll.u32 %v316_v58, 16 }
 0x134   :  { %v342_v4 = vshll.u32 %v338_v3, 16  ;;  %v988_v32 = vshll.u32 %v979_v37, %v986_v12  ;;  %vm344_vm2 = vc.u32 %v336_v6, %v340_v45  ;;  %v4549_v18 = vmov 0  }
 0x135   :  { %vm322_vm14 = vc.u32 %v314_v43, %v318_v41  ;;  %v324_v15 = vadd.s32 %v318_v41, %v314_v43  ;;  %v989_v7 = vshrl.u32 %v971_v11, %v987_v39  ;;  %v992_v22 = vadd.s32 127, %v991_v26 }
 0x136   :  { %v323_v23 = vsel %vm322_vm14, 1, %v4549_v18  ;;  %v345_v33 = vsel %vm344_vm2, 1, %v4549_v18  ;;  %v346_v62 = vadd.s32 %v340_v45, %v336_v6  ;;  %v117_v8 = vadd.s32 1, %v2943_v27 }
 0x137   :  { %v325_v56 = vadd.s32 %v323_v23, %v317_v50  ;;  %vm326_vm7 = vc.u32 %v324_v15, %v320_v16  ;;  %v347_v19 = vadd.s32 %v345_v33, %v339_v35  ;;  %v990_v17 = vor.u32 %v989_v7, %v988_v32 }
 0x138   :  { %v993_v25 = vshll.u32 %v992_v22, 23  ;;  %v327_v42 = vsel %vm326_vm7, 1, %v4549_v18  ;;  %v319_v29 = vshrl.u32 %v315_v52, 16  ;;  %vm348_vm8 = vc.u32 %v346_v62, %v342_v4 }
 0x139   :  { %v329_v37 = vadd.s32 %v327_v42, %v325_v56  ;;  %v115_v41 = vor.u32 8388608, %v114_v2  ;;  %v341_v39 = vshrl.u32 %v337_v63, 16  ;;  %v349_v11 = vsel %vm348_vm8, 1, %v4549_v18 }
 0x13a   :  { %v994_v43 = vor.u32 4788187, %v993_v25  ;;  %vm118_vm9 = vcmp.gt.s32.totalorder %v117_v8, 0  ;;  %v321_v12 = vshrl.u32 %v316_v58, 16  ;;  %v351_v23 = vadd.s32 %v349_v11, %v347_v19 }
 0x13b   :  { %v330_v26 = vadd.s32 %v329_v37, %v319_v29  ;;  %v119_v50 = vsel %vm118_vm9, %v117_v8, 0  ;;  %vm879_vm14 = vcmp.lt.s32.totalorder %v3567_v60, 0  ;;  %v997_v22 = vcvt.s32.f32 %v990_v17 }
 0x13c   :  { %v995_v45 = vand.u32 2147483647, %v994_v43  ;;  %v300_v35 = vsel %vm294_vm5, %v297_v5, %v299_v46  ;;  %v121_v52 = vand.u32 31, %v119_v50  ;;  %v343_v6 = vshrl.u32 %v338_v3, 16 }
 0x13d   :  { %v331_v27 = vadd.s32 %v330_v26, %v321_v12  ;;  %v350_v2 = vadd.s32 %v346_v62, %v342_v4  ;;  %v352_v16 = vadd.s32 %v351_v23, %v341_v39  ;;  %v120_v32 = vshrl.u32 %v119_v50, 5 }
 0x13e   :  { %v998_v63 = vmul.f32 %v997_v22, %v995_v45  ;;  %v122_v15 = vsub.s32 32, %v121_v52  ;;  %v3825_v7 = vshll.u32 %v115_v41, 8  ;;  %v4550_v8 = vmov 683565275  }
 0x13f   :  { %v353_v29 = vadd.s32 %v352_v16, %v343_v6  ;;  %vm356_vm2 = vc.u32 %v331_v27, %v350_v2  ;;  %v124_v58 = vshll.u32 %v4550_v8, %v121_v52  ;;  %v4551_v33 = vmov 2475754826  }
 0x140   :  { %v127_v56 = vshll.u32 %v4551_v33, %v121_v52  ;;  %v999_v19 = vxor.u32 2147483648, %v998_v63  ;;  %v125_v10 = vshrl.u32 %v4551_v33, %v122_v15  ;;  %v4552_v5 = vmov 2131351028  }
 0x141   :  { %v128_v46 = vshrl.u32 %v4552_v5, %v122_v15  ;;  %v130_v3 = vshll.u32 %v4552_v5, %v121_v52  ;;  %v357_v4 = vadd.s32 1, %v353_v29  ;;  %v4553_v62 = vmov 2102212464  }
 0x142   :  { %v131_v17 = vshrl.u32 %v4553_v62, %v122_v15  ;;  %v133_v25 = vshll.u32 %v4553_v62, %v121_v52  ;;  %v134_v42 = vshrl.u32 %v4547_v44, %v122_v15  ;;  %v4554_v37 = vand.u32 2147483647, %v3567_v60 }
 0x143   :  { %v354_v43 = vmul.u32 %v3766_v28, %v300_v35  ;;  %v126_v39 = vor.u32 %v125_v10, %v124_v58  ;;  %v129_v11 = vor.u32 %v128_v46, %v127_v56  ;;  %v156_v12 = vand.u32 65535, %v3825_v7 }
 0x144   :  { %vm3837_vm5 = vcmp.le.f32.partialorder %v4554_v37, 0.7853982  ;;  %v358_v26 = vsel %vm356_vm2, %v357_v4, %v353_v29  ;;  %v132_v23 = vor.u32 %v131_v17, %v130_v3  ;;  %v135_v50 = vor.u32 %v134_v42, %v133_v25 }
 0x145   :  { %v157_v45 = vshrl.u32 %v3825_v7, 16  ;;  %v359_v22 = vadd.s32 %v358_v26, %v354_v43  ;;  %v136_v6 = vshll.u32 %v4547_v44, %v121_v52  ;;  %v137_v16 = vshrl.u32 %v4548_v0, %v122_v15 }
 0x146   :  { %v1155_v33 = vsub.s32 4, %v3492_v24  ;;  %v1000_v28 = vsel %vm879_vm14, %v999_v19, %v998_v63  ;;  %v123_v35 = vshrl.u32 %v4550_v8, %v122_v15  ;;  %vm139_vm7 = vcmp.lt.s32.totalorder %v120_v32, 1 }
 0x147   :  { %vm142_vm8 = vcmp.lt.s32.totalorder %v120_v32, 4  ;;  %v360_v58 = vadd.s32 536870912, %v359_v22  ;;  %v138_v29 = vor.u32 %v137_v16, %v136_v6  ;;  %v147_v10 = vsel %vm139_vm7, %v126_v39, %v129_v11 }
 0x148   :  { %v144_v56 = vsel %vm142_vm8, %v132_v23, 2102212464  ;;  %vm140_vm9 = vcmp.lt.s32.totalorder %v120_v32, 2  ;;  %vm141_vm2 = vcmp.lt.s32.totalorder %v120_v32, 3  ;;  %v148_v5 = vsel %vm142_vm8, %v135_v50, 920167782 }
 0x149   :  { %v151_v46 = vsel %vm139_vm7, %v129_v11, %v132_v23  ;;  %v3851_v44 = vshrl.u32 %v360_v58, 30  ;;  %v143_v0 = vsel %vm139_vm7, %v123_v35, %v126_v39  ;;  %v149_v52 = vsel %vm141_vm2, %v132_v23, %v148_v5 }
 0x14a   :  { %v152_v3 = vsel %vm142_vm8, %v138_v29, 1326507024  ;;  %v145_v4 = vsel %vm141_vm2, %v129_v11, %v144_v56  ;;  %v150_v63 = vsel %vm140_vm9, %v147_v10, %v149_v52  ;;  %v1156_v15 = vsel %vm1033_vm1, %v1155_v33, %v3492_v24 }
 0x14b   :  { %v153_v19 = vsel %vm141_vm2, %v135_v50, %v152_v3  ;;  %v362_v8 = vshll.u32 %v3851_v44, 30  ;;  %v180_v17 = vand.u32 65535, %v150_v63  ;;  %v181_v25 = vshrl.u32 %v150_v63, 16 }
 0x14c   :  { %v154_v62 = vsel %vm140_vm9, %v151_v46, %v153_v19  ;;  %v3862_v42 = vsel %vm3837_vm5, %v3567_v60, %v1000_v28  ;;  %v355_v37 = vadd.s32 %v350_v2, %v331_v27  ;;  %v3865_v26 = vsel %vm140_vm9, %v143_v0, %v145_v4 }
 0x14d   :  { %v158_v43 = vand.u32 65535, %v154_v62  ;;  %v159_v39 = vshrl.u32 %v154_v62, 16  ;;  %v363_v11 = vsub.s32 %v359_v22, %v362_v8  ;;  %v183_v23 = vmul.u32 %v181_v25, %v156_v12 }
 0x14e   :  { %v3869_v24 = vsel %vm3713_vm11, 0, %v1156_v15  ;;  %v182_v16 = vmul.u32 %v180_v17, %v156_v12  ;;  %v1309_v33 = vsub.s32 4, %v3677_v59  ;;  %v184_v35 = vmul.u32 %v180_v17, %v157_v45 }
 0x14f   :  { %v161_v50 = vmul.u32 %v159_v39, %v156_v12  ;;  %v162_v6 = vmul.u32 %v158_v43, %v157_v45  ;;  %vm364_vm1 = vcmp.lt.s32.totalorder %v363_v11, 0  ;;  %v365_v28 = vsub.s32 0, %v363_v11 }
 0x150   :  { %v186_v27 = vshll.u32 %v183_v23, 16  ;;  %v160_v2 = vmul.u32 %v158_v43, %v156_v12  ;;  %v163_v58 = vmul.u32 %v159_v39, %v157_v45  ;;  %v185_v32 = vmul.u32 %v181_v25, %v157_v45 }
 0x151   :  { %v164_v22 = vshll.u32 %v161_v50, 16  ;;  %v366_v29 = vsel %vm364_vm1, %v365_v28, %v363_v11  ;;  %v165_v56 = vshrl.u32 %v161_v50, 16  ;;  %v166_v10 = vshll.u32 %v162_v6, 16 }
 0x152   :  { %v167_v5 = vshrl.u32 %v162_v6, 16  ;;  %v367_v61 = vclz %v366_v29  ;;  %vm190_vm7 = vc.u32 %v182_v16, %v186_v27  ;;  %v188_v52 = vshll.u32 %v184_v35, 16 }
 0x153   :  { %vm168_vm11 = vc.u32 %v160_v2, %v164_v22  ;;  %v170_v46 = vadd.s32 %v164_v22, %v160_v2  ;;  %v191_v3 = vsel %vm190_vm7, 1, %v4549_v18  ;;  %v192_v4 = vadd.s32 %v186_v27, %v182_v16 }
 0x154   :  { %v169_v0 = vsel %vm168_vm11, 1, %v4549_v18  ;;  %v2947_v63 = vadd.s32 4294967294, %v367_v61  ;;  %v193_v12 = vadd.s32 %v191_v3, %v185_v32  ;;  %v187_v15 = vshrl.u32 %v183_v23, 16 }
 0x155   :  { %v171_v19 = vadd.s32 %v169_v0, %v163_v58  ;;  %vm172_vm8 = vc.u32 %v170_v46, %v166_v10  ;;  %v189_v8 = vshrl.u32 %v184_v35, 16  ;;  %vm194_vm9 = vc.u32 %v192_v4, %v188_v52 }
 0x156   :  { %v173_v45 = vsel %vm172_vm8, 1, %v4549_v18  ;;  %vm2948_vm2 = vcmp.lt.s32.totalorder %v2947_v63, 0  ;;  %v195_v17 = vsel %vm194_vm9, 1, %v4549_v18  ;;  %v1310_v25 = vsel %vm1187_vm10, %v1309_v33, %v3677_v59 }
 0x157   :  { %v175_v62 = vadd.s32 %v173_v45, %v171_v19  ;;  %v370_v43 = vsel %vm2948_vm2, 0, %v2947_v63  ;;  %v197_v39 = vadd.s32 %v195_v17, %v193_v12  ;;  %v1160_v50 = vmul.f32 -0.001358992, %v3747_v34 }
 0x158   :  { %v1167_v6 = vmul.f32 -0.00019511016, %v3747_v34  ;;  %v371_v16 = vsub.s32 32, %v370_v43  ;;  %v375_v28 = vsub.s32 4294967266, %v370_v43  ;;  %v196_v23 = vadd.s32 %v192_v4, %v188_v52 }
 0x159   :  { %v176_v27 = vadd.s32 %v175_v62, %v165_v56  ;;  %v198_v35 = vadd.s32 %v197_v39, %v187_v15  ;;  %v1161_v2 = vadd.f32 0.041655596, %v1160_v50  ;;  %v2413_v22 = vadd.s32 3, %v3869_v24 }
 0x15a   :  { %v1168_v58 = vadd.f32 0.008332121, %v1167_v6  ;;  %v372_v18 = vshll.u32 %v363_v11, %v370_v43  ;;  %v373_v32 = vshrl.u32 %v355_v37, %v371_v16  ;;  %v376_v29 = vadd.s32 127, %v375_v28 }
 0x15b   :  { %v177_v10 = vadd.s32 %v176_v27, %v167_v5  ;;  %v199_v59 = vadd.s32 %v198_v35, %v189_v8  ;;  %v1162_v33 = vmul.f32 %v1161_v2, %v3747_v34  ;;  %v3886_v46 = vsel %vm3756_vm13, 0, %v1310_v25 }
 0x15c   :  { %v1169_v61 = vmul.f32 %v1168_v58, %v3747_v34  ;;  %v3890_v56 = vmul.f32 %v3752_v55, %v3752_v55  ;;  %v374_v0 = vor.u32 %v373_v32, %v372_v18  ;;  %v377_v52 = vshll.u32 %v376_v29, 23 }
 0x15d   :  { %vm202_vm10 = vc.u32 %v177_v10, %v196_v23  ;;  %v3894_v37 = vmul.f32 %v3862_v42, %v3862_v42  ;;  %v203_v11 = vadd.s32 1, %v199_v59  ;;  %v1163_v5 = vadd.f32 -0.4999988, %v1162_v33 }
 0x15e   :  { %v1170_v3 = vadd.f32 -0.16666654, %v1169_v61  ;;  %v378_v4 = vor.u32 4788187, %v377_v52  ;;  %v200_v47 = vmul.u32 %v3825_v7, %v3865_v26  ;;  %v2414_v63 = vand.u32 3, %v2413_v22 }
 0x15f   :  { %v2568_v19 = vadd.s32 3, %v3886_v46  ;;  %v204_v12 = vsel %vm202_vm10, %v203_v11, %v199_v59  ;;  %v1164_v45 = vmul.f32 %v1163_v5, %v3747_v34  ;;  %v1314_v8 = vmul.f32 -0.001358992, %v3810_v30 }
 0x160   :  { %v1171_v15 = vmul.f32 %v1170_v3, %v3747_v34  ;;  %vm263_vm13 = vcmp.lt.s32.totalorder %v3654_v49, 0  ;;  %v379_v62 = vand.u32 2147483647, %v378_v4  ;;  %v381_v17 = vcvt.s32.f32 %v374_v0 }
 0x161   :  { %v205_v25 = vadd.s32 %v204_v12, %v200_v47  ;;  %v1321_v43 = vmul.f32 -0.00019511016, %v3810_v30  ;;  %v3904_v39 = vadd.f32 1.0, %v1164_v45  ;;  %v1315_v26 = vadd.f32 0.041655596, %v1314_v8 }
 0x162   :  { %v1172_v7 = vadd.f32 1.0, %v1171_v15  ;;  %v847_v50 = vsub.s32 4, %v3583_v48  ;;  %v382_v6 = vmul.f32 %v381_v17, %v379_v62  ;;  %vm2415_vm1 = vcmp.lt.s32.totalorder %v2414_v63, 2 }
 0x163   :  { %v206_v16 = vadd.s32 536870912, %v205_v25  ;;  %v1322_v28 = vadd.f32 0.008332121, %v1321_v43  ;;  %v3907_v34 = vadd.s32 %v196_v23, %v177_v10  ;;  %v1316_v35 = vmul.f32 %v1315_v26, %v3810_v30 }
 0x164   :  { %v3910_v27 = vmul.f32 %v1172_v7, %v3738_v53  ;;  %v2569_v2 = vand.u32 3, %v2568_v19  ;;  %v1181_v22 = vxor.u32 2147483648, %v3904_v39  ;;  %vm2416_vm11 = vcmp.eq.s32.totalorder %v2414_v63, 0 }
 0x165   :  { %v3913_v58 = vshrl.u32 %v206_v16, 30  ;;  %v1323_v18 = vmul.f32 %v1322_v28, %v3810_v30  ;;  %v383_v32 = vxor.u32 2147483648, %v382_v6  ;;  %vm1174_vm7 = vweird.f32 %v3327_v38 }
 0x166   :  { %v1178_v29 = vxor.u32 2147483648, %v3910_v27  ;;  %v1317_v23 = vadd.f32 -0.4999988, %v1316_v35  ;;  %v848_v53 = vsel %vm725_vm12, %v847_v50, %v3583_v48  ;;  %vm2419_vm8 = vcmp.eq.s32.totalorder %v2414_v63, 2 }
 0x167   :  { %v208_v10 = vshll.u32 %v3913_v58, 30  ;;  %v1324_v59 = vadd.f32 -0.16666654, %v1323_v18  ;;  %v852_v33 = vmul.f32 -0.001358992, %v3890_v56  ;;  %vm2571_vm9 = vcmp.eq.s32.totalorder %v2569_v2, 0 }
 0x168   :  { %v1318_v61 = vmul.f32 %v1317_v23, %v3810_v30  ;;  %v2418_v0 = vsel %vm2416_vm11, %v3904_v39, %v1178_v29  ;;  %vm2574_vm2 = vcmp.eq.s32.totalorder %v2569_v2, 2  ;;  %v859_v52 = vmul.f32 -0.00019511016, %v3890_v56 }
 0x169   :  { %v3929_v11 = vsub.s32 %v205_v25, %v208_v10  ;;  %v1325_v48 = vmul.f32 %v1324_v59, %v3810_v30  ;;  %v2421_v5 = vsel %vm2419_vm8, %v1181_v22, %v3910_v27  ;;  %vm2570_vm12 = vcmp.lt.s32.totalorder %v2569_v2, 2 }
 0x16a   :  { %v3937_v3 = vsel %vm3723_vm6, 0, %v848_v53  ;;  %v3941_v4 = vsel %vm263_vm13, %v383_v32, %v382_v6  ;;  %v3943_v47 = vadd.f32 1.0, %v1318_v61  ;;  %vm1328_vm10 = vweird.f32 %v3473_v9 }
 0x16b   :  { %v853_v19 = vadd.f32 0.041655596, %v852_v33  ;;  %v860_v12 = vadd.f32 0.008332121, %v859_v52  ;;  %vm210_vm11 = vcmp.lt.s32.totalorder %v3929_v11, 0  ;;  %v211_v30 = vsub.s32 0, %v3929_v11 }
 0x16c   :  { %v1326_v45 = vadd.f32 1.0, %v1325_v48  ;;  %v2422_v15 = vsel %vm2415_vm1, %v2418_v0, %v2421_v5  ;;  %v1335_v57 = vxor.u32 2147483648, %v3943_v47  ;;  %v1001_v17 = vsub.s32 4, %v3774_v51 }
 0x16d   :  { %v854_v8 = vmul.f32 %v853_v19, %v3890_v56  ;;  %v861_v62 = vmul.f32 %v860_v12, %v3890_v56  ;;  %v212_v25 = vsel %vm210_vm11, %v211_v30, %v3929_v11  ;;  %v1006_v7 = vmul.f32 -0.001358992, %v3894_v37 }
 0x16e   :  { %v3955_v43 = vmul.f32 %v1326_v45, %v3788_v20  ;;  %v1013_v26 = vmul.f32 -0.00019511016, %v3894_v37  ;;  %v213_v50 = vclz %v212_v25  ;;  %v1002_v16 = vsel %vm879_vm14, %v1001_v17, %v3774_v51 }
 0x16f   :  { %v855_v63 = vadd.f32 -0.4999988, %v854_v8  ;;  %v862_v6 = vadd.f32 -0.16666654, %v861_v62  ;;  %v2423_v35 = vsel %vm1174_vm7, nan, %v2422_v15  ;;  %v3977_v59 = vsel %vm3837_vm5, 0, %v1002_v16 }
 0x170   :  { %v1332_v28 = vxor.u32 2147483648, %v3955_v43  ;;  %v2576_v20 = vsel %vm2574_vm2, %v1335_v57, %v3955_v43  ;;  %v1007_v18 = vadd.f32 0.041655596, %v1006_v7  ;;  %v2944_v32 = vadd.s32 4294967294, %v213_v50 }
 0x171   :  { %v856_v23 = vmul.f32 %v855_v63, %v3890_v56  ;;  %v863_v53 = vmul.f32 %v862_v6, %v3890_v56  ;;  %v1014_v10 = vadd.f32 0.008332121, %v1013_v26  ;;  %v2103_v61 = vadd.s32 3, %v3937_v3 }
 0x172   :  { %v2573_v51 = vsel %vm2571_vm9, %v3943_v47, %v1332_v28  ;;  %v1008_v33 = vmul.f32 %v1007_v18, %v3894_v37  ;;  %vm2945_vm6 = vcmp.lt.s32.totalorder %v2944_v32, 0  ;;  %vm866_vm14 = vweird.f32 %v3365_v54 }
 0x173   :  { %v2577_v0 = vsel %vm2570_vm12, %v2573_v51, %v2576_v20  ;;  %v3982_v52 = vadd.f32 1.0, %v856_v23  ;;  %v864_v56 = vadd.f32 1.0, %v863_v53  ;;  %v216_v48 = vsel %vm2945_vm6, 0, %v2944_v32 }
 0x174   :  { %v2578_v5 = vsel %vm1328_vm10, nan, %v2577_v0  ;;  %v1009_v19 = vadd.f32 -0.4999988, %v1008_v33  ;;  %v1015_v41 = vmul.f32 %v1014_v10, %v3894_v37  ;;  %v217_v12 = vsub.s32 32, %v216_v48 }
 0x175   :  { %v218_v30 = vshll.u32 %v3929_v11, %v216_v48  ;;  %v221_v45 = vsub.s32 4294967266, %v216_v48  ;;  %v2586_v15 = vpack.c.bf16 %v2578_v5, %v2423_v35  ;;  %v3990_v2 = vmul.f32 %v864_v56, %v3752_v55 }
 0x176   :  { %v873_v8 = vxor.u32 2147483648, %v3982_v52  ;;  %v1010_v62 = vmul.f32 %v1009_v19, %v3894_v37  ;;  %v1016_v17 = vadd.f32 -0.16666654, %v1015_v41  ;;  %v219_v25 = vshrl.u32 %v3907_v34, %v217_v12 }
 0x177   :  { %v222_v7 = vadd.s32 127, %v221_v45  ;;  %2667 = vmatpush.bf16.msra.mxu0 %v2586_v15  ;;  %3023 = vmatpush.bf16.msra.mxu2 %v2586_v15  ;;  %v2104_v26 = vand.u32 3, %v2103_v61  ;;  %v2258_v50 = vadd.s32 3, %v3977_v59  ;;  %v870_v11 = vxor.u32 2147483648, %v3990_v2 }
 0x178   :  { %3024 = vmatpush.bf16.msra.mxu3 %v2586_v15  ;;  %v3997_v63 = vadd.f32 1.0, %v1010_v62  ;;  %v1017_v55 = vmul.f32 %v1016_v17, %v3894_v37  ;;  %v539_v6 = vsub.s32 4, %v3344_v13  ;;  %v220_v16 = vor.u32 %v219_v25, %v218_v30 }
 0x179   :  { %v223_v35 = vshll.u32 %v222_v7, 23  ;;  %vm1020_vm5 = vweird.f32 %v3567_v60  ;;  %vm2106_vm1 = vcmp.eq.s32.totalorder %v2104_v26, 0  ;;  %vm109_vm8 = vcmp.lt.s32.totalorder %v3761_v1, 0 }
 0x17a   :  { %v1018_v34 = vadd.f32 1.0, %v1017_v55  ;;  %vm2105_vm9 = vcmp.lt.s32.totalorder %v2104_v26, 2  ;;  %v2108_v20 = vsel %vm2106_vm1, %v3982_v52, %v870_v11  ;;  %vm2109_vm2 = vcmp.eq.s32.totalorder %v2104_v26, 2 }
 0x17b   :  { %v4557_v18 = vand.u32 2147483647, %v3761_v1  ;;  %v224_v32 = vor.u32 4788187, %v223_v35  ;;  %v1027_v23 = vxor.u32 2147483648, %v3997_v63  ;;  %v2111_v53 = vsel %vm2109_vm2, %v873_v8, %v3990_v2  ;;  %v4563_v35 = vld [vmem:[#allocation9_spill] sm:$0xff] }
 0x17c   :  { %v2259_v10 = vand.u32 3, %v2258_v50  ;;  %v4560_v51 = vand.u32 2147483647, %v3654_v49  ;;  %v4023_v61 = vmul.f32 %v1018_v34, %v3862_v42  ;;  %v2112_v0 = vsel %vm2105_vm9, %v2108_v20, %v2111_v53 }
 0x17d   :  { %vm4008_vm12 = vcmp.le.f32.partialorder %v4557_v18, 0.7853982  ;;  %v540_v56 = vsel %vm417_vm3, %v539_v6, %v3344_v13  ;;  %v544_v48 = vmul.f32 -0.001358992, %v3556_v40  ;;  %v225_v5 = vand.u32 2147483647, %v224_v32 }
 0x17e   :  { %vm4018_vm11 = vcmp.le.f32.partialorder %v4560_v51, 0.7853982  ;;  %v227_v19 = vcvt.s32.f32 %v220_v16  ;;  %v2113_v41 = vsel %vm866_vm14, nan, %v2112_v0  ;;  %vm2260_vm6 = vcmp.lt.s32.totalorder %v2259_v10, 2 }
 0x17f   :  { %v1024_v12 = vxor.u32 2147483648, %v4023_v61  ;;  %vm2261_vm1 = vcmp.eq.s32.totalorder %v2259_v10, 0  ;;  %vm2264_vm2 = vcmp.eq.s32.totalorder %v2259_v10, 2  ;;  %v545_v30 = vadd.f32 0.041655596, %v544_v48 }
 0x180   :  { %v228_v42 = vmul.f32 %v227_v19, %v225_v5  ;;  %v2266_v45 = vsel %vm2264_vm2, %v1027_v23, %v4023_v61  ;;  %v4037_v13 = vsel %vm3530_vm15, 0, %v540_v56  ;;  %v551_v15 = vmul.f32 -0.00019511016, %v3556_v40 }
 0x181   :  { %v2263_v62 = vsel %vm2261_vm1, %v3997_v63, %v1024_v12  ;;  %v546_v17 = vmul.f32 %v545_v30, %v3556_v40  ;;  %v693_v25 = vsub.s32 4, %v3388_v31  ;;  %v698_v7 = vmul.f32 -0.001358992, %v3563_v14 }
 0x182   :  { %v229_v26 = vxor.u32 2147483648, %v228_v42  ;;  %v2267_v50 = vsel %vm2260_vm6, %v2263_v62, %v2266_v45  ;;  %v552_v55 = vadd.f32 0.008332121, %v551_v15  ;;  %v705_v6 = vmul.f32 -0.00019511016, %v3563_v14 }
 0x183   :  { %v2268_v36 = vsel %vm1020_vm5, nan, %v2267_v50  ;;  %v547_v16 = vadd.f32 -0.4999988, %v546_v17  ;;  %v694_v34 = vsel %vm571_vm4, %v693_v25, %v3388_v31  ;;  %v699_v20 = vadd.f32 0.041655596, %v698_v7 }
 0x184   :  { %v230_v18 = vsel %vm109_vm8, %v229_v26, %v228_v42  ;;  %v2585_v32 = vpack.c.bf16 %v2268_v36, %v2113_v41  ;;  %v553_v53 = vmul.f32 %v552_v55, %v3556_v40  ;;  %v4057_v51 = vsel %vm3536_vm0, 0, %v694_v34 }
 0x185   :  { %v4062_v0 = vsel %vm4008_vm12, %v3761_v1, %v230_v18  ;;  %v548_v56 = vmul.f32 %v547_v16, %v3556_v40  ;;  %v700_v31 = vmul.f32 %v699_v20, %v3563_v14  ;;  %v706_v48 = vadd.f32 0.008332121, %v705_v6  ;;  %v4565_v20 = vld [vmem:[#allocation11_spill] sm:$0xff] }
 0x186   :  { %v4070_v5 = vsel %vm4018_vm11, %v3654_v49, %v3941_v4  ;;  %v4074_v19 = vmul.f32 %v4062_v0, %v4062_v0  ;;  %2668 = vmatpush.bf16.msra.mxu0 %v2585_v32  ;;  %3025 = vmatpush.bf16.msra.mxu2 %v2585_v32  ;;  %v554_v41 = vadd.f32 -0.16666654, %v553_v53  ;;  %v1793_v30 = vadd.s32 3, %v4037_v13 }
 0x187   :  { %3026 = vmatpush.bf16.msra.mxu3 %v2585_v32  ;;  %v4077_v42 = vadd.f32 1.0, %v548_v56  ;;  %v701_v45 = vadd.f32 -0.4999988, %v700_v31  ;;  %v707_v15 = vmul.f32 %v706_v48, %v3563_v14  ;;  %v1948_v62 = vadd.s32 3, %v4057_v51 }
 0x188   :  { %v555_v4 = vmul.f32 %v554_v41, %v3556_v40  ;;  %v1794_v17 = vand.u32 3, %v1793_v30  ;;  %v231_v25 = vsub.s32 4, %v3913_v58  ;;  %v236_v7 = vmul.f32 -0.001358992, %v4074_v19  ;;  %v4566_v30 = vld [vmem:[#allocation12_spill] sm:$0xff] }
 0x189   :  { %v4086_v26 = vmul.f32 %v4070_v5, %v4070_v5  ;;  %v702_v50 = vmul.f32 %v701_v45, %v3563_v14  ;;  %v708_v55 = vadd.f32 -0.16666654, %v707_v15  ;;  %v1949_v6 = vand.u32 3, %v1948_v62 }
 0x18a   :  { %v556_v36 = vadd.f32 1.0, %v555_v4  ;;  %vm4532_vm3 = vweird.f32 %v3246_v21  ;;  %v565_v16 = vxor.u32 2147483648, %v4077_v42  ;;  %vm1795_vm4 = vcmp.lt.s32.totalorder %v1794_v17, 2 }
 0x18b   :  { %v4091_v40 = vadd.f32 1.0, %v702_v50  ;;  %v709_v34 = vmul.f32 %v708_v55, %v3563_v14  ;;  %vm1796_vm15 = vcmp.eq.s32.totalorder %v1794_v17, 0  ;;  %vm1799_vm0 = vcmp.eq.s32.totalorder %v1794_v17, 2 }
 0x18c   :  { %v4095_v18 = vmul.f32 %v556_v36, %v4565_v20  ;;  %vm712_vm9 = vweird.f32 %v4563_v35  ;;  %vm1950_vm6 = vcmp.lt.s32.totalorder %v1949_v6, 2  ;;  %v232_v32 = vsel %vm109_vm8, %v231_v25, %v3913_v58 }
 0x18d   :  { %v237_v53 = vadd.f32 0.041655596, %v236_v7  ;;  %v710_v10 = vadd.f32 1.0, %v709_v34  ;;  %v719_v56 = vxor.u32 2147483648, %v4091_v40  ;;  %vm1951_vm1 = vcmp.eq.s32.totalorder %v1949_v6, 0 }
 0x18e   :  { %v243_v31 = vmul.f32 -0.00019511016, %v4074_v19  ;;  %v562_v14 = vxor.u32 2147483648, %v4095_v18  ;;  %vm1954_vm2 = vcmp.eq.s32.totalorder %v1949_v6, 2  ;;  %v4106_v48 = vsel %vm4008_vm12, 0, %v232_v32 }
 0x18f   :  { %v238_v41 = vmul.f32 %v237_v53, %v4074_v19  ;;  %v4110_v45 = vmul.f32 %v710_v10, %v4566_v30  ;;  %v385_v15 = vsub.s32 4, %v3851_v44  ;;  %v390_v62 = vmul.f32 -0.001358992, %v4086_v26 }
 0x190   :  { %v244_v58 = vadd.f32 0.008332121, %v243_v31  ;;  %v1798_v4 = vsel %vm1796_vm15, %v4077_v42, %v562_v14  ;;  %v1801_v37 = vsel %vm1799_vm0, %v565_v16, %v4095_v18  ;;  %v397_v7 = vmul.f32 -0.00019511016, %v4086_v26 }
 0x191   :  { %v239_v25 = vadd.f32 -0.4999988, %v238_v41  ;;  %v716_v50 = vxor.u32 2147483648, %v4110_v45  ;;  %v1802_v55 = vsel %vm1795_vm4, %v1798_v4, %v1801_v37  ;;  %v1956_v36 = vsel %vm1954_vm2, %v719_v56, %v4110_v45 }
 0x192   :  { %v245_v34 = vmul.f32 %v244_v58, %v4074_v19  ;;  %v1803_v20 = vsel %vm4532_vm3, nan, %v1802_v55  ;;  %v386_v53 = vsel %vm263_vm13, %v385_v15, %v3851_v44  ;;  %v391_v10 = vadd.f32 0.041655596, %v390_v62 }
 0x193   :  { %v240_v32 = vmul.f32 %v239_v25, %v4074_v19  ;;  %v1953_v17 = vsel %vm1951_vm1, %v4091_v40, %v716_v50  ;;  %v4141_v41 = vsel %vm4018_vm11, 0, %v386_v53  ;;  %v398_v30 = vadd.f32 0.008332121, %v397_v7 }
 0x194   :  { %v246_v31 = vadd.f32 -0.16666654, %v245_v34  ;;  %v1957_v58 = vsel %vm1950_vm6, %v1953_v17, %v1956_v36  ;;  %v392_v37 = vmul.f32 %v391_v10, %v4086_v26  ;;  %v1483_v44 = vadd.s32 3, %v4106_v48 }
 0x195   :  { %v4144_v4 = vadd.f32 1.0, %v240_v32  ;;  %v1958_v15 = vsel %vm712_vm9, nan, %v1957_v58  ;;  %v399_v25 = vmul.f32 %v398_v30, %v4086_v26  ;;  %v1638_v33 = vadd.s32 3, %v4141_v41 }
 0x196   :  { %v247_v62 = vmul.f32 %v246_v31, %v4074_v19  ;;  %v2584_v55 = vpack.c.bf16 %v1958_v15, %v1803_v20  ;;  %v393_v34 = vadd.f32 -0.4999988, %v392_v37  ;;  %v1484_v7 = vand.u32 3, %v1483_v44 }
 0x197   :  { %v400_v36 = vadd.f32 -0.16666654, %v399_v25  ;;  %v1639_v32 = vand.u32 3, %v1638_v33  ;;  %v257_v53 = vxor.u32 2147483648, %v4144_v4  ;;  %v1175_v17 = vand.u32 3, %v3869_v24 }
 0x198   :  { %v248_v6 = vadd.f32 1.0, %v247_v62  ;;  %2669 = vmatpush.bf16.msra.mxu0 %v2584_v55  ;;  %3027 = vmatpush.bf16.msra.mxu2 %v2584_v55  ;;  %v394_v10 = vmul.f32 %v393_v34, %v4086_v26  ;;  %vm250_vm13 = vweird.f32 %v3761_v1  ;;  %vm404_vm8 = vweird.f32 %v3654_v49  ;;  %v3021_v1 = vld [vmem:[%s4504_s3 + $0x10] sm:$0xff]  ;;  %v3022_v49 = vld [vmem:[%s4504_s3 + $0x18] sm:$0xff] }
 0x199   :  { %3028 = vmatpush.bf16.msra.mxu3 %v2584_v55  ;;  %v401_v20 = vmul.f32 %v400_v36, %v4086_v26  ;;  %vm1485_vm12 = vcmp.lt.s32.totalorder %v1484_v7, 2  ;;  %vm1486_vm11 = vcmp.eq.s32.totalorder %v1484_v7, 0  ;;  %vm1489_vm4 = vcmp.eq.s32.totalorder %v1484_v7, 2 }
 0x19a   :  { %v4157_v19 = vmul.f32 %v248_v6, %v4062_v0  ;;  %v4161_v31 = vadd.f32 1.0, %v394_v10  ;;  %vm1640_vm15 = vcmp.lt.s32.totalorder %v1639_v32, 2  ;;  %vm1641_vm0 = vcmp.eq.s32.totalorder %v1639_v32, 0 }
 0x19b   :  { %v402_v58 = vadd.f32 1.0, %v401_v20  ;;  %vm1644_vm6 = vcmp.eq.s32.totalorder %v1639_v32, 2  ;;  %vm1177_vm1 = vcmp.eq.s32.totalorder %v1175_v17, 0  ;;  %v1329_v0 = vand.u32 3, %v3886_v46  ;;  %v2641_v20 = vpop.permute.xlu0 %2640 }
 0x19c   :  { %v254_v30 = vxor.u32 2147483648, %v4157_v19  ;;  %v1491_v24 = vsel %vm1489_vm4, %v257_v53, %v4157_v19  ;;  %v411_v37 = vxor.u32 2147483648, %v4161_v31  ;;  %v867_v15 = vand.u32 3, %v3937_v3 }
 0x19d   :  { %v4170_v26 = vmul.f32 %v402_v58, %v4070_v5  ;;  %vm1176_vm2 = vcmp.lt.s32.totalorder %v1175_v17, 2  ;;  %v1179_v25 = vsel %vm1177_vm1, %v3904_v39, %v1178_v29  ;;  %vm1180_vm4 = vcmp.eq.s32.totalorder %v1175_v17, 2  ;;  %v3019_v17 = vld [vmem:[%s4504_s3] sm:$0xff] }
 0x19e   :  { %v1488_v44 = vsel %vm1486_vm11, %v4144_v4, %v254_v30  ;;  %v1182_v5 = vsel %vm1180_vm4, %v1181_v22, %v3910_v27  ;;  %vm1331_vm3 = vcmp.eq.s32.totalorder %v1329_v0, 0  ;;  %v1021_v33 = vand.u32 3, %v3977_v59 }
 0x19f   :  { %v1492_v62 = vsel %vm1485_vm12, %v1488_v44, %v1491_v24  ;;  %v408_v46 = vxor.u32 2147483648, %v4170_v26  ;;  %vm1330_vm11 = vcmp.lt.s32.totalorder %v1329_v0, 2  ;;  %v1333_v3 = vsel %vm1331_vm3, %v3943_v47, %v1332_v28 }
 0x1a0   :  { %v1493_v55 = vsel %vm250_vm13, nan, %v1492_v62  ;;  %vm1334_vm12 = vcmp.eq.s32.totalorder %v1329_v0, 2  ;;  %v1646_v39 = vsel %vm1644_vm6, %v411_v37, %v4170_v26  ;;  %vm869_vm1 = vcmp.eq.s32.totalorder %v867_v15, 0 }
 0x1a1   :  { %v1643_v29 = vsel %vm1641_vm0, %v4161_v31, %v408_v46  ;;  %v1336_v27 = vsel %vm1334_vm12, %v1335_v57, %v3955_v43  ;;  %v1183_v28 = vsel %vm1176_vm2, %v1179_v25, %v1182_v5  ;;  %v871_v34 = vsel %vm869_vm1, %v3982_v52, %v870_v11 }
 0x1a2   :  { %v1647_v22 = vsel %vm1640_vm15, %v1643_v29, %v1646_v39  ;;  %v1337_v59 = vsel %vm1330_vm11, %v1333_v3, %v1336_v27  ;;  %vm868_vm3 = vcmp.lt.s32.totalorder %v867_v15, 2  ;;  %vm872_vm0 = vcmp.eq.s32.totalorder %v867_v15, 2 }
 0x1a3   :  { %v1648_v7 = vsel %vm404_vm8, nan, %v1647_v22  ;;  %vm1023_vm6 = vcmp.eq.s32.totalorder %v1021_v33, 0  ;;  %v1338_v47 = vsel %vm1328_vm10, nan, %v1337_v59  ;;  %v874_v57 = vsel %vm872_vm0, %v873_v8, %v3990_v2 }
 0x1a4   :  { %v2583_v6 = vpack.c.bf16 %v1648_v7, %v1493_v55  ;;  %v1025_v43 = vsel %vm1023_vm6, %v3997_v63, %v1024_v12  ;;  %v875_v36 = vsel %vm868_vm3, %v871_v34, %v874_v57  ;;  %vm1026_vm15 = vcmp.eq.s32.totalorder %v1021_v33, 2 }
 0x1a5   :  { %v559_v11 = vand.u32 3, %v4037_v13  ;;  %v713_v32 = vand.u32 3, %v4057_v51  ;;  %v1184_v9 = vsel %vm1174_vm7, nan, %v1183_v28  ;;  %vm1022_vm10 = vcmp.lt.s32.totalorder %v1021_v33, 2 }
 0x1a6   :  { %2670 = vmatpush.bf16.msra.mxu0 %v2583_v6  ;;  %3029 = vmatpush.bf16.msra.mxu2 %v2583_v6  ;;  %v1028_v52 = vsel %vm1026_vm15, %v1027_v23, %v4023_v61  ;;  %v2582_v2 = vpack.c.bf16 %v1338_v47, %v1184_v9  ;;  %v251_v12 = vand.u32 3, %v4106_v48  ;;  %v876_v13 = vsel %vm866_vm14, nan, %v875_v36 }
 0x1a7   :  { %3030 = vmatpush.bf16.msra.mxu3 %v2583_v6  ;;  %v1029_v8 = vsel %vm1022_vm10, %v1025_v43, %v1028_v52  ;;  %vm561_vm2 = vcmp.eq.s32.totalorder %v559_v11, 0  ;;  %v405_v10 = vand.u32 3, %v4141_v41  ;;  %vm560_vm7 = vcmp.lt.s32.totalorder %v559_v11, 2 }
 0x1a8   :  { %v1030_v51 = vsel %vm1020_vm5, nan, %v1029_v8  ;;  %v563_v38 = vsel %vm561_vm2, %v4077_v42, %v562_v14  ;;  %vm564_vm4 = vcmp.eq.s32.totalorder %v559_v11, 2  ;;  %vm715_vm11 = vcmp.eq.s32.totalorder %v713_v32, 0 }
 0x1a9   :  { %vm718_vm12 = vcmp.eq.s32.totalorder %v713_v32, 2  ;;  %v566_v54 = vsel %vm564_vm4, %v565_v16, %v4095_v18  ;;  %vm714_vm14 = vcmp.lt.s32.totalorder %v713_v32, 2  ;;  %v717_v60 = vsel %vm715_vm11, %v4091_v40, %v716_v50 }
 0x1aa   :  { %2671 = vmatpush.bf16.msra.mxu0 %v2582_v2  ;;  %3031 = vmatpush.bf16.msra.mxu2 %v2582_v2  ;;  %v720_v63 = vsel %vm718_vm12, %v719_v56, %v4110_v45  ;;  %v2581_v23 = vpack.c.bf16 %v1030_v51, %v876_v13  ;;  %v567_v61 = vsel %vm560_vm7, %v563_v38, %v566_v54  ;;  %vm253_vm5 = vcmp.eq.s32.totalorder %v251_v12, 0 }
 0x1ab   :  { %3032 = vmatpush.bf16.msra.mxu3 %v2582_v2  ;;  %v721_v14 = vsel %vm714_vm14, %v717_v60, %v720_v63  ;;  %vm252_vm1 = vcmp.lt.s32.totalorder %v251_v12, 2  ;;  %v255_v42 = vsel %vm253_vm5, %v4144_v4, %v254_v30  ;;  %vm256_vm3 = vcmp.eq.s32.totalorder %v251_v12, 2  ;;  %v2626_v30 = vpop.permute.xlu1 %2625 }
 0x1ac   :  { %vm407_vm0 = vcmp.eq.s32.totalorder %v405_v10, 0  ;;  %v722_v16 = vsel %vm712_vm9, nan, %v721_v14  ;;  %v258_v40 = vsel %vm256_vm3, %v257_v53, %v4157_v19  ;;  %vm410_vm6 = vcmp.eq.s32.totalorder %v405_v10, 2  ;;  %v2636_v19 = vpop.permute.xlu2 %2635 }
 0x1ad   :  { %v409_v18 = vsel %vm407_vm0, %v4161_v31, %v408_v46  ;;  %v259_v56 = vsel %vm252_vm1, %v255_v42, %v258_v40  ;;  %vm406_vm15 = vcmp.lt.s32.totalorder %v405_v10, 2  ;;  %v412_v48 = vsel %vm410_vm6, %v411_v37, %v4170_v26  ;;  %v2616_v26 = vpop.permute.xlu0 %2615 }
 0x1ae   :  { %2672 = vmatpush.bf16.msra.mxu0 %v2581_v23  ;;  %3033 = vmatpush.bf16.msra.mxu2 %v2581_v23  ;;  %vm4567_vm9 = vweird.f32 %v3246_v21  ;;  %v413_v45 = vsel %vm406_vm15, %v409_v18, %v412_v48  ;;  %v260_v41 = vsel %vm250_vm13, nan, %v259_v56  ;;  %v3020_v21 = vld [vmem:[%s4504_s3 + $0x8] sm:$0xff] }
 0x1af   :  { %3034 = vmatpush.bf16.msra.mxu3 %v2581_v23  ;;  %v568_v35 = vsel %vm4567_vm9, nan, %v567_v61  ;;  %v414_v4 = vsel %vm404_vm8, nan, %v413_v45 }
 0x1b0   :  { %v2580_v50 = vpack.c.bf16 %v722_v16, %v568_v35  ;;  %v2579_v53 = vpack.c.bf16 %v414_v4, %v260_v41 }
 0x1b2   :  { %2673 = vmatpush.bf16.msra.mxu0 %v2580_v50  ;;  %3035 = vmatpush.bf16.msra.mxu2 %v2580_v50 }
 0x1b3   :  { %3036 = vmatpush.bf16.msra.mxu3 %v2580_v50  ;;  %v2621_v46 = vpop.permute.xlu1 %2620 }
 0x1b4   :  { %v2631_v31 = vpop.permute.xlu2 %2630 }
 0x1b5   :  { %v2611_v28 = vpop.permute.xlu0 %2610 }
 0x1b6   :  { %2674 = vmatpush.bf16.msra.mxu0 %v2579_v53  ;;  %3037 = vmatpush.bf16.msra.mxu2 %v2579_v53 }
 0x1b7   :  { %3038 = vmatpush.bf16.msra.mxu3 %v2579_v53 }
 0x1b9   :  { %2675 = vmatmul.bf16.vlgmr.msra.gmra.mxu0 %v3019_v17  ;;  %2680 = vmatmul.bf16.vlgmr.msra.gmra.mxu2 %v3020_v21 }
 0x1ba   :  { %2685 = vmatmul.bf16.vlgmr.msra.gmra.mxu3 %v3021_v1 }
 0x1bc   :  { %v2606_v37 = vpop.permute.xlu2 %2605 }
 0x1ca   :  { %2690 = vmatmul.bf16.gmra.mxu3 %v3022_v49 }
 0x236   :  { %v2676_v0 = vpop.f32.mrf.mxu0 }
 0x237   :  { %v4273_v44 = vadd.f32 %v2676_v0, %v2606_v37 }
 0x239   :  { %v3007_v55 = vmul.f32 -1.442695, %v4273_v44 }
 0x23b   :  { %3052 = vpow2.f32 %v3007_v55 }
 0x23c   :  { %v2681_v58 = vpop.f32.mrf.mxu2 }
 0x23d   :  { %v2686_v24 = vpop.f32.mrf.mxu3  ;;  %v4275_v15 = vadd.f32 %v2681_v58, %v2616_v26 }
 0x23e   :  { %v4277_v5 = vadd.f32 %v2686_v24, %v2626_v30  ;;  %v2678_v39 = vpop.f32.mrf.mxu0 }
 0x23f   :  { %v3009_v29 = vmul.f32 -1.442695, %v4275_v15  ;;  %v4288_v34 = vadd.f32 %v2678_v39, %v2611_v28 }
 0x240   :  { %v3011_v22 = vmul.f32 -1.442695, %v4277_v5 }
 0x241   :  { %3054 = vpow2.f32 %v3009_v29  ;;  %v3008_v47 = vmul.f32 -1.442695, %v4288_v34  ;;  %v3053_v57 = vpop.eup %3052 }
 0x242   :  { %v4294_v9 = vadd.f32 1.0, %v3053_v57 }
 0x244   :  { %v2683_v62 = vpop.f32.mrf.mxu2 }
 0x245   :  { %v2688_v25 = vpop.f32.mrf.mxu3  ;;  %v4282_v3 = vadd.f32 %v2683_v62, %v2621_v46 }
 0x246   :  { %v4279_v33 = vadd.f32 %v2688_v25, %v2631_v31 }
 0x247   :  { %v3010_v59 = vmul.f32 -1.442695, %v4282_v3  ;;  %v3055_v36 = vpop.eup %3054 }
 0x248   :  { %v3012_v27 = vmul.f32 -1.442695, %v4279_v33  ;;  %v4296_v2 = vadd.f32 1.0, %v3055_v36 }
 0x24a   :  { %3056 = vpow2.f32 %v3012_v27  ;;  %v2767_v30 = vand.u32 2147483647, %v4296_v2  ;;  %v2769_v58 = vand.u32 2147483648, %v4296_v2  ;;  %vm2763_vm12 = vweird.f32 %v4296_v2 }
 0x24b   :  { %3058 = vpow2.f32 %v3011_v22 }
 0x24c   :  { %3060 = vpow2.f32 %v3010_v59 }
 0x24d   :  { %v2691_v7 = vpop.f32.mrf.mxu3  ;;  %3062 = vpow2.f32 %v3008_v47 }
 0x24e   :  { %v4290_v6 = vadd.f32 %v2691_v7, %v2636_v19 }
 0x250   :  { %v3013_v43 = vmul.f32 -1.442695, %v4290_v6  ;;  %v3057_v11 = vpop.eup %3056 }
 0x251   :  { %v3059_v32 = vpop.eup %3058  ;;  %v4298_v12 = vadd.f32 1.0, %v3057_v11 }
 0x252   :  { %v3061_v52 = vpop.eup %3060  ;;  %3064 = vpow2.f32 %v3013_v43  ;;  %v4300_v13 = vadd.f32 1.0, %v3059_v32 }
 0x253   :  { %3066 = vrcp.f32 %v4294_v9  ;;  %v4303_v51 = vadd.f32 1.0, %v3061_v52  ;;  %v3063_v10 = vpop.eup %3062  ;;  %vm2808_vm7 = vweird.f32 %v4298_v12 }
 0x254   :  { %3068 = vrcp.f32 %v4296_v2  ;;  %v4314_v23 = vadd.f32 1.0, %v3063_v10  ;;  %v2799_v1 = vand.u32 2147483648, %v4300_v13  ;;  %vm2793_vm13 = vweird.f32 %v4300_v13 }
 0x255   :  { %v2693_v8 = vpop.f32.mrf.mxu3  ;;  %3070 = vrcp.f32 %v4298_v12  ;;  %v2797_v0 = vand.u32 2147483647, %v4300_v13  ;;  %v2782_v27 = vand.u32 2147483647, %v4303_v51  ;;  %v2784_v22 = vand.u32 2147483648, %v4303_v51 }
 0x256   :  { %v4305_v38 = vadd.f32 %v2693_v8, %v2641_v20  ;;  %3072 = vrcp.f32 %v4300_v13  ;;  %v4359_v25 = vor.u32 1.1754944e-38, %v2799_v1  ;;  %vm2778_vm2 = vweird.f32 %v4303_v51 }
 0x257   :  { %3074 = vrcp.f32 %v4303_v51  ;;  %vm4376_vm14 = vcmp.eq.f32.partialorder %v2797_v0, 8.507059e+37  ;;  %v2812_v8 = vand.u32 2147483647, %v4298_v12  ;;  %v2814_v10 = vand.u32 2147483648, %v4298_v12 }
 0x258   :  { %v3065_v54 = vpop.eup %3064  ;;  %v3014_v60 = vmul.f32 -1.442695, %v4305_v38  ;;  %vm2748_vm0 = vweird.f32 %v4314_v23 }
 0x259   :  { %v4312_v63 = vadd.f32 1.0, %v3065_v54  ;;  %v4316_v61 = vpop.eup %3066  ;;  %v2815_v1 = vor.u32 1.1754944e-38, %v2814_v10  ;;  %v2865_v10 = vpop.permute.xlu1 %2864 }
 0x25a   :  { %3076 = vpow2.f32 %v3014_v60  ;;  %v4319_v14 = vpop.eup %3068  ;;  %v2729_v56 = vmul.f32 %v4316_v61, %v4294_v9  ;;  %vm2734_vm3 = vweird.f32 %v4316_v61 }
 0x25b   :  { %3078 = vrcp.f32 %v4312_v63  ;;  %v4321_v42 = vpop.eup %3070  ;;  %v2759_v45 = vmul.f32 %v4319_v14, %v4296_v2  ;;  %vm2764_vm10 = vweird.f32 %v4319_v14  ;;  %v2829_v57 = vand.u32 2147483648, %v4312_v63 }
 0x25c   :  { %v4323_v16 = vpop.eup %3072  ;;  %3080 = vrcp.f32 %v4314_v23  ;;  %v2804_v48 = vmul.f32 %v4321_v42, %v4298_v12  ;;  %v2730_v21 = vsub.f32 1.0, %v2729_v56  ;;  %vm2809_vm11 = vweird.f32 %v4321_v42 }
 0x25d   :  { %v4326_v40 = vpop.eup %3074  ;;  %v2789_v50 = vmul.f32 %v4323_v16, %v4300_v13  ;;  %v2760_v20 = vsub.f32 1.0, %v2759_v45  ;;  %vm2794_vm8 = vweird.f32 %v4323_v16  ;;  %vm2823_vm5 = vweird.f32 %v4312_v63  ;;  %vm4406_vm9 = vmor %vm2808_vm7, %vm2809_vm11 }
 0x25e   :  { %v2774_v53 = vmul.f32 %v4326_v40, %v4303_v51  ;;  %v2805_v49 = vsub.f32 1.0, %v2804_v48  ;;  %v4356_v62 = vmul.f32 %v4316_v61, %v2730_v21  ;;  %v2827_v11 = vand.u32 2147483647, %v4312_v63 }
 0x25f   :  { %v2790_v31 = vsub.f32 1.0, %v2789_v50  ;;  %v2761_v29 = vmul.f32 %v4319_v14, %v2760_v20  ;;  %vm2779_vm15 = vweird.f32 %v4326_v40 }
 0x260   :  { %v3077_v18 = vpop.eup %3076  ;;  %v2775_v37 = vsub.f32 1.0, %v2774_v53  ;;  %v2806_v46 = vmul.f32 %v4321_v42, %v2805_v49 }
 0x261   :  { %v4332_v35 = vpop.eup %3078  ;;  %v4338_v41 = vadd.f32 1.0, %v3077_v18  ;;  %v2791_v39 = vmul.f32 %v4323_v16, %v2790_v31  ;;  %v2762_v12 = vadd.f32 %v4319_v14, %v2761_v29 }
 0x262   :  { %v2819_v4 = vmul.f32 %v4332_v35, %v4312_v63  ;;  %v4345_v17 = vpop.eup %3080  ;;  %vm2824_vm4 = vweird.f32 %v4332_v35  ;;  %v2776_v47 = vmul.f32 %v4326_v40, %v2775_v37  ;;  %v2807_v36 = vadd.f32 %v4321_v42, %v2806_v46 }
 0x263   :  { %3082 = vrcp.f32 %v4338_v41  ;;  %v2744_v26 = vmul.f32 %v4345_v17, %v4314_v23  ;;  %v2792_v52 = vadd.f32 %v4323_v16, %v2791_v39  ;;  %vm4388_vm1 = vmor %vm2823_vm5, %vm2824_vm4  ;;  %v2844_v60 = vand.u32 2147483648, %v4338_v41 }
 0x264   :  { %v2820_v19 = vsub.f32 1.0, %v2819_v4  ;;  %v2842_v56 = vand.u32 2147483647, %v4338_v41  ;;  %v2777_v45 = vadd.f32 %v4326_v40, %v2776_v47  ;;  %v2830_v4 = vor.u32 1.1754944e-38, %v2829_v57  ;;  %vm4414_vm4 = vmor %vm2793_vm13, %vm2794_vm8 }
 0x265   :  { %v2745_v7 = vsub.f32 1.0, %v2744_v26  ;;  %v2811_v53 = vsel %vm4406_vm9, %v4321_v42, %v2807_v36  ;;  %vm2828_vm5 = vcmp.eq.f32.partialorder %v2827_v11, 8.507059e+37  ;;  %vm2838_vm7 = vweird.f32 %v4338_v41  ;;  %vm4433_vm9 = vmor %vm2778_vm2, %vm2779_vm15 }
 0x266   :  { %v2821_v24 = vmul.f32 %v4332_v35, %v2820_v19  ;;  %v2845_v19 = vor.u32 1.1754944e-38, %v2844_v60  ;;  %v2796_v13 = vsel %vm4414_vm4, %v4323_v16, %v2792_v52  ;;  %vm2813_vm13 = vcmp.eq.f32.partialorder %v2812_v8, 8.507059e+37  ;;  %vm4449_vm2 = vmor %vm2763_vm12, %vm2764_vm10 }
 0x267   :  { %v2746_v48 = vmul.f32 %v4345_v17, %v2745_v7  ;;  %vm2843_vm8 = vcmp.eq.f32.partialorder %v2842_v56, 8.507059e+37  ;;  %v2752_v42 = vand.u32 2147483647, %v4314_v23  ;;  %v2816_v31 = vsel %vm2813_vm13, %v2815_v1, %v2811_v53 }
 0x268   :  { %v2822_v28 = vadd.f32 %v4332_v35, %v2821_v24  ;;  %v2781_v16 = vsel %vm4433_vm9, %v4326_v40, %v2777_v45  ;;  %v2732_v46 = vadd.f32 %v4316_v61, %v4356_v62  ;;  %v2801_v29 = vsel %vm4376_vm14, %v4359_v25, %v2796_v13 }
 0x269   :  { %v3083_v55 = vpop.eup %3082  ;;  %v2747_v0 = vadd.f32 %v4345_v17, %v2746_v48  ;;  %v2754_v40 = vand.u32 2147483648, %v4314_v23  ;;  %v2853_v62 = vmul.f32 %v2816_v31, %v4279_v33  ;;  %vm2733_vm10 = vweird.f32 %v4294_v9 }
 0x26a   :  { %v2834_v59 = vmul.f32 %v3083_v55, %v4338_v41  ;;  %v2826_v63 = vsel %vm4388_vm1, %v4332_v35, %v2822_v28  ;;  %vm2839_vm6 = vweird.f32 %v3083_v55  ;;  %vm2749_vm1 = vweird.f32 %v4345_v17  ;;  %vm2735_vm15 = vmor %vm2733_vm10, %vm2734_vm3 }
 0x26b   :  { %v2831_v49 = vsel %vm2828_vm5, %v2830_v4, %v2826_v63  ;;  %vm2840_vm11 = vmor %vm2838_vm7, %vm2839_vm6  ;;  %vm2783_vm6 = vcmp.eq.f32.partialorder %v2782_v27, 8.507059e+37  ;;  %v2739_v28 = vand.u32 2147483648, %v4294_v9  ;;  %v2770_v25 = vor.u32 1.1754944e-38, %v2769_v58  ;;  %v47_v63 = vld [vmem:[%s4502_s1] sm:$0x3] }
 0x26c   :  { %v2835_v32 = vsub.f32 1.0, %v2834_v59  ;;  %v2854_v26 = vmul.f32 %v2831_v49, %v4290_v6  ;;  %v2785_v6 = vor.u32 1.1754944e-38, %v2784_v22  ;;  %vm4471_vm12 = vmor %vm2748_vm0, %vm2749_vm1  ;;  %vm2768_vm14 = vcmp.eq.f32.partialorder %v2767_v30, 8.507059e+37 }
 0x26d   :  { %v2852_v33 = vmul.f32 %v2801_v29, %v4277_v5  ;;  %v2751_v58 = vsel %vm4471_vm12, %v4345_v17, %v2747_v0  ;;  %v2755_v27 = vor.u32 1.1754944e-38, %v2754_v40  ;;  %v2736_v59 = vsel %vm2735_vm15, %v4316_v61, %v2732_v46 }
 0x26e   :  { %v2836_v18 = vmul.f32 %v3083_v55, %v2835_v32  ;;  %v2786_v51 = vsel %vm2783_vm6, %v2785_v6, %v2781_v16  ;;  %vm2753_vm0 = vcmp.eq.f32.partialorder %v2752_v42, 8.507059e+37  ;;  %v2740_v2 = vor.u32 1.1754944e-38, %v2739_v28 }
 0x26f   :  { %v2858_v7 = vpack.c.bf16 %v2853_v62, %v2852_v33  ;;  %v2756_v30 = vsel %vm2753_vm0, %v2755_v27, %v2751_v58  ;;  %vm2868_vm3 = vcmask 523264   ;;  %v2867_v60 = vperm.slane %v2865_v10, 0 }
 0x270   :  { %v2837_v21 = vadd.f32 %v3083_v55, %v2836_v18  ;;  %v2849_v17 = vmul.f32 %v2756_v30, %v4288_v34  ;;  %v2906_v18 = vstv %s3016_s30  ;;  %v2918_v56 = vstv %s3018_s9 }
 0x271   :  { %v2903_v4 = vstv %s2902_s10  ;;  %v2907_v35 = vmul.f32 %v2906_v18, %v47_v63  ;;  %v2919_v53 = vmul.f32 %v2918_v56, %v47_v63 }
 0x272   :  { %v2841_v20 = vsel %vm2840_vm11, %v3083_v55, %v2837_v21  ;;  %v2904_v49 = vmul.f32 %v2903_v4, %v47_v63 }
 0x273   :  { %v2846_v24 = vsel %vm2843_vm8, %v2845_v19, %v2841_v20  ;;  %v2909_v13 = vrot.slane %v2907_v35, 1  ;;  %v2921_v42 = vrot.slane %v2919_v53, 1 }
 0x274   :  { %v2855_v37 = vmul.f32 %v2846_v24, %v4305_v38  ;;  %v2766_v38 = vsel %vm4449_vm2, %v4319_v14, %v2762_v12  ;;  %v2737_v14 = vand.u32 2147483647, %v4294_v9  ;;  %v2851_v9 = vmul.f32 %v2786_v51, %v4282_v3  ;;  %v2860_v3 = vld [vmem:[%s4506_s5] sm:$0x1] }
 0x275   :  { %v2771_v23 = vsel %vm2768_vm14, %v2770_v25, %v2766_v38  ;;  %v2915_v12 = vstv %s3017_s11  ;;  %v2911_v24 = vadd.f32 %v2909_v13, %v2904_v49 }
 0x276   :  { %v2859_v39 = vpack.c.bf16 %v2855_v37, %v2854_v26  ;;  %vm2738_vm4 = vcmp.eq.f32.partialorder %v2737_v14, 8.507059e+37  ;;  %v2850_v5 = vmul.f32 %v2771_v23, %v4275_v15  ;;  %v46_v15 = vld [vmem:[%s4501_s0] sm:$0x1]  ;;  %v2916_v20 = vmul.f32 %v2915_v12, %v47_v63  ;;  %s3137_s0 = smov [#allocation6]  }
 0x277   :  { %v2741_v47 = vsel %vm2738_vm4, %v2740_v2, %v2736_v59  ;;  %v2887_v61 = vmul.f32 0.099, %v46_v15  ;;  %s2931_s1 = sshll.u32 %s3137_s0, 4  ;;  %s2932_s1 = int_to_ptr.vmem [resolvable:$true] %s2931_s1 }
 0x278   :  { %2876 = vmatpush.bf16.msra.mxu1 %v2859_v39  ;;  %v2857_v57 = vpack.c.bf16 %v2851_v9, %v2850_v5  ;;  %v2848_v43 = vmul.f32 %v2741_v47, %v4273_v44  ;;  %v2923_v0 = vadd.f32 %v2921_v42, %v2916_v20 }
 0x279   :  { %v2888_v11 = vadd.f32 0.1, %v2887_v61 }
 0x27a   :  { %v2856_v36 = vpack.c.bf16 %v2849_v17, %v2848_v43 }
 0x27b   :  { %3084 = vrsqrt.f32 %v2888_v11  ;;  %vm2896_vm5 = vcmp.eq.f32.partialorder %v2888_v11, inf  ;;  %vm2898_vm7 = vcmp.eq.f32.partialorder %v2888_v11, 0.0  ;;  %v2899_v1 = vand.u32 2147483648, %v2888_v11 }
 0x27c   :  { %2877 = vmatpush.bf16.msra.mxu1 %v2858_v7 }
 0x280   :  { %2878 = vmatpush.bf16.msra.mxu1 %v2857_v57 }
 0x281   :  { %v3085_v34 = vpop.eup %3084 }
 0x282   :  { %v2890_v32 = vmul.f32 %v3085_v34, %v2888_v11 }
 0x284   :  { %2879 = vmatpush.bf16.msra.mxu1 %v2856_v36  ;;  %v2891_v52 = vmul.f32 %v3085_v34, %v2890_v32 }
 0x286   :  { %v2892_v44 = vmul.f32 0.5, %v2891_v52 }
 0x287   :  { %3015 = vmatmul.msk.bf16.vlgmr.msra.gmra.mxu1 %vm2868_vm3, %v2860_v3 }
 0x288   :  { %v2893_v8 = vsub.f32 1.5, %v2892_v44 }
 0x28a   :  { %v2894_v54 = vmul.f32 %v3085_v34, %v2893_v8 }
 0x28c   :  { %v2895_v50 = vmul.f32 %v2894_v54, %v2888_v11 }
 0x28e   :  { %v2897_v19 = vsel %vm2896_vm5, %v2888_v11, %v2895_v50 }
 0x28f   :  { %v2900_v31 = vsel %vm2898_vm7, %v2899_v1, %v2897_v19 }
 0x304   :  { %v2881_v48 = vpop.f32.mrf.mxu1 }
 0x305   :  { %v2882_v45 = vadd.f32 %v2881_v48, %v2867_v60 }
 0x307   :  { %v2885_v21 = vmul.f32 1.442695, %v2882_v45 }
 0x309   :  { %3086 = vpow2.f32 %v2885_v21 }
 0x30c   :  { %v2883_v41 = vpop.f32.mrf.mxu1 }
 0x30f   :  { %v3087_v16 = vpop.eup %3086 }
 0x310   :  { %v2901_v26 = vmul.f32 %v3087_v16, %v2900_v31 }
 0x312   :  { %v2912_v37 = vmul.f32 %v2911_v24, %v2901_v26  ;;  %v2924_v46 = vmul.f32 %v2923_v0, %v2901_v26 }
 0x314   :  { %2913 = vst [vmem:[#allocation6] sm:$0x1] %v2912_v37 }
 0x315   :  { %2925 = vst [vmem:[#allocation6 + $0x1] sm:$0x1] %v2924_v46 }
 0x316   :  { %2936 = dma.vmem_to_hbm [thread:$0]  %s2932_s1, 32, %s2934_s14, [#allocation4]  }
 0x317   :  { %3127 = dma.done.wait [#allocation4], 32  }
 0x318   :  { %3128 = vsyncadd [#allocation4], 4294967264 }
 0x319   :  { %2941 = vsyncpa [#allocation4], 1 }
 0x31a   :  { %2942 = vsyncpa [#allocation5], 1 }

</bundles_post_ra>
